<compile_context>
chip_gen: v6e
topology: v6e:2x2x1
jax: 0.10.0
libtpu: 0.0.40
codegen_flags: <defaults>
</compile_context>

<pallas_src>
import functools
import math

import jax
import jax.numpy as jnp
from jax import lax
from jax.experimental import pallas as pl
from jax.experimental.pallas import tpu as pltpu

TM = 512  # tile size along the big spatial (lane-dense) axis


# ----------------------------------------------------------------------------
# Pallas kernels
# ----------------------------------------------------------------------------
def _conv2d_kernel(w_ref, a_ref, b_ref, o_ref, *, relu):
    # out(Cout, bm) = W(Cout, K) @ A(K, bm) + bias ; K fully resident -> no scratch.
    r = jnp.dot(w_ref[...], a_ref[...], preferred_element_type=jnp.float32)
    r = r + b_ref[...]
    if relu:
        r = jnp.maximum(r, 0.0)
    o_ref[...] = r.astype(o_ref.dtype)


def _conv3d_tap_kernel(w_ref, a_ref, b_ref, o_ref, acc_ref, *, relu):
    # Accumulate over the kernel-depth taps (last grid axis, "arbitrary").
    t = pl.program_id(3)

    @pl.when(t == 0)
    def _():
        acc_ref[...] = jnp.zeros_like(acc_ref)

    acc_ref[...] += jnp.dot(w_ref[...], a_ref[...],
                            preferred_element_type=jnp.float32)

    @pl.when(t == pl.num_programs(3) - 1)
    def _():
        r = acc_ref[...] + b_ref[...]
        if relu:
            r = jnp.maximum(r, 0.0)
        o_ref[...] = r.astype(o_ref.dtype)


# ----------------------------------------------------------------------------
# Convolution wrappers (im2col glue in bf16 + Pallas GEMM hot path)
# ----------------------------------------------------------------------------
def conv2d_pallas(x, w, bias, relu=False):
    """x: (B, Cin, H, W); w: (Cout, Cin, KH, KW); bias: (Cout,).  stride 1, 'same'."""
    bsz, cin, h, wd = x.shape
    cout, _, kh, kw = w.shape
    ck = cin * kh * kw
    hw = h * wd

    xb = x.astype(jnp.bfloat16)
    patches = lax.conv_general_dilated_patches(
        xb, (kh, kw), (1, 1), ((kh // 2, kh // 2), (kw // 2, kw // 2)))
    a = patches.reshape(bsz, ck, hw)                    # native layout, no transpose
    w2 = w.reshape(cout, ck).astype(jnp.bfloat16)       # GEMM LHS
    b2 = bias.reshape(cout, 1).astype(jnp.float32)

    bm = hw if hw <= TM else TM
    grid = (bsz, pl.cdiv(hw, bm))

    cost = pl.CostEstimate(
        flops=2 * bsz * hw * ck * cout,
        transcendentals=0,
        bytes_accessed=bsz * ck * hw * 2 + cout * ck * 2 + bsz * cout * hw * 4)

    out = pl.pallas_call(
        functools.partial(_conv2d_kernel, relu=relu),
        out_shape=jax.ShapeDtypeStruct((bsz, cout, hw), jnp.float32),
        grid=grid,
        in_specs=[
            pl.BlockSpec((cout, ck), lambda b, m: (0, 0)),         # weight, resident
            pl.BlockSpec((None, ck, bm), lambda b, m: (b, 0, m)),  # patches
            pl.BlockSpec((cout, 1), lambda b, m: (0, 0)),          # bias
        ],
        out_specs=pl.BlockSpec((None, cout, bm), lambda b, m: (b, 0, m)),
        compiler_params=pltpu.CompilerParams(
            dimension_semantics=("parallel", "parallel")),
        cost_estimate=cost,
    )(w2, a, b2)
    return out.reshape(bsz, cout, h, wd)


def conv3d_pallas(x, w, bias, relu=False):
    """x: (N, Cin, D, H, W); w: (Cout, Cin, KD, KH, KW); bias: (Cout,). stride 1, 'same'.

    Decomposed over kernel-depth taps: only 2-D (KH*KW) patches are materialized,
    the KD taps are accumulated inside the kernel (grid axis 3).
    """
    n, cin, d, h, wd = x.shape
    cout, _, kd, kh, kw = w.shape
    pd = kd // 2
    ck2 = cin * kh * kw
    hw = h * wd
    dp = d + 2 * pd

    xb = jnp.pad(x.astype(jnp.bfloat16),
                 ((0, 0), (0, 0), (pd, pd), (0, 0), (0, 0)))
    x2d = xb.transpose(0, 2, 1, 3, 4).reshape(n * dp, cin, h, wd)
    patches = lax.conv_general_dilated_patches(
        x2d, (kh, kw), (1, 1), ((kh // 2, kh // 2), (kw // 2, kw // 2)))
    a = patches.reshape(n, dp, ck2, hw)                           # (N, Dpad, K2, HW)
    wt = w.transpose(2, 0, 1, 3, 4).reshape(kd, cout, ck2).astype(jnp.bfloat16)
    b2 = bias.reshape(cout, 1).astype(jnp.float32)

    bm = hw if hw <= TM else TM
    grid = (n, d, pl.cdiv(hw, bm), kd)

    cost = pl.CostEstimate(
        flops=2 * n * d * hw * ck2 * kd * cout,
        transcendentals=0,
        bytes_accessed=(n * d * kd * ck2 * hw * 2 + kd * cout * ck2 * 2
                        + n * d * cout * hw * 4))

    out = pl.pallas_call(
        functools.partial(_conv3d_tap_kernel, relu=relu),
        out_shape=jax.ShapeDtypeStruct((n, d, cout, hw), jnp.float32),
        grid=grid,
        in_specs=[
            pl.BlockSpec((None, cout, ck2), lambda b, dd, m, t: (t, 0, 0)),
            pl.BlockSpec((None, None, ck2, bm), lambda b, dd, m, t: (b, dd + t, 0, m)),
            pl.BlockSpec((cout, 1), lambda b, dd, m, t: (0, 0)),
        ],
        out_specs=pl.BlockSpec((None, None, cout, bm),
                               lambda b, dd, m, t: (b, dd, 0, m)),
        scratch_shapes=[pltpu.VMEM((cout, bm), jnp.float32)],
        compiler_params=pltpu.CompilerParams(
            dimension_semantics=("parallel", "parallel", "parallel", "arbitrary")),
        cost_estimate=cost,
    )(wt, a, b2)
    return out.reshape(n, d, cout, h, wd).transpose(0, 2, 1, 3, 4)


# ----------------------------------------------------------------------------
# Plain-JAX glue ops (data movement / tiny reductions)
# ----------------------------------------------------------------------------
def max_pool2d(x):  # (N, C, H, W) -> (N, C, H/2, W/2)
    n, c, h, w = x.shape
    return x.reshape(n, c, h // 2, 2, w // 2, 2).max(axis=(3, 5))


def upsample2d(x, s):  # bilinear
    n, c, h, w = x.shape
    return jax.image.resize(x, (n, c, h * s, w * s), method="linear")


def upsample3d(x, sf):  # trilinear along (D, H, W)
    n, c, d, h, w = x.shape
    return jax.image.resize(
        x, (n, c, d * sf[0], h * sf[1], w * sf[2]), method="linear")


# ----------------------------------------------------------------------------
# Parameter init (deterministic, synthetic; PyTorch conv weight layout (Cout,Cin,*k))
# ----------------------------------------------------------------------------
def _conv_params(key, cin, cout, kshape):
    kw_, kb_ = jax.random.split(key)
    fan_in = cin * math.prod(kshape)
    w = jax.random.normal(kw_, (cout, cin, *kshape), jnp.float32) / math.sqrt(fan_in)
    b = 0.01 * jax.random.normal(kb_, (cout,), jnp.float32)
    return {"w": w, "b": b}


def init_unet(key_iter, in_channels, n_classes, depth, wf):
    params = {"down": [], "up": [], "last": None}
    prev = in_channels
    for i in range(depth):
        ch = 2 ** (wf + i)
        params["down"].append([
            _conv_params(next(key_iter), prev, ch, (3, 3)),
            _conv_params(next(key_iter), ch, ch, (3, 3)),
        ])
        prev = ch
    for i in reversed(range(depth - 1)):
        ch = 2 ** (wf + i)
        params["up"].append({
            "upconv": _conv_params(next(key_iter), prev, ch, (1, 1)),   # up_mode='upsample'
            "conv": [
                _conv_params(next(key_iter), prev, ch, (3, 3)),         # after concat: 2*ch = prev
                _conv_params(next(key_iter), ch, ch, (3, 3)),
            ],
        })
        prev = ch
    params["last"] = _conv_params(next(key_iter), prev, n_classes, (1, 1))
    return params


def init_srcnn3d(key_iter, n_channels, num_features):
    nf = num_features
    return {
        "conv1": _conv_params(next(key_iter), n_channels, nf, (9, 9, 9)),
        "conv2": _conv_params(next(key_iter), nf, nf // 2, (1, 1, 1)),
        "conv3": _conv_params(next(key_iter), nf // 2, n_channels, (5, 5, 5)),
    }


def init_thisnewnet(key, in_channels, n_classes, depth, num_features):
    keys = iter(jax.random.split(key, 64))
    wf = round(math.log(num_features, 2))
    return {
        "unet": init_unet(keys, in_channels, n_classes, depth, wf),
        "srcnn": init_srcnn3d(keys, in_channels, num_features),
    }


# ----------------------------------------------------------------------------
# Forward passes
# ----------------------------------------------------------------------------
def unet_forward(p, x):  # x: (N, Cin, H, W)
    skips = []
    for i, blk in enumerate(p["down"]):
        x = conv2d_pallas(x, blk[0]["w"], blk[0]["b"], relu=True)
        x = conv2d_pallas(x, blk[1]["w"], blk[1]["b"], relu=True)
        if i != len(p["down"]) - 1:
            skips.append(x)
            x = max_pool2d(x)
    for i, up in enumerate(p["up"]):
        skip = skips[-1 - i]
        x = upsample2d(x, 2)
        x = conv2d_pallas(x, up["upconv"]["w"], up["upconv"]["b"], relu=False)
        x = jnp.concatenate([x, skip], axis=1)
        x = conv2d_pallas(x, up["conv"][0]["w"], up["conv"][0]["b"], relu=True)
        x = conv2d_pallas(x, up["conv"][1]["w"], up["conv"][1]["b"], relu=True)
    return conv2d_pallas(x, p["last"]["w"], p["last"]["b"], relu=False)


def srcnn3d_forward(p, x, scale_factor):  # x: (N, C, D, H, W)
    # TODO(synk): if the original SRCNN3D is residual (out = interp + cnn), add interp.
    interp = upsample3d(x, scale_factor)          # aux_out: interpolation only
    h = conv3d_pallas(interp, p["conv1"]["w"], p["conv1"]["b"], relu=True)
    h = conv3d_pallas(h, p["conv2"]["w"], p["conv2"]["b"], relu=True)
    out = conv3d_pallas(h, p["conv3"]["w"], p["conv3"]["b"], relu=False)
    return interp, out


def thisnewnet_forward(params, images, *, scale_factor, sliceup_first=False):
    # images: (N, C, D, H, W).  gt is None / no loss_func -> return output only.
    # TODO(synk): loss branch (loss_func, gt) not exercised; loss_func unspecified.
    def run_unet(vol):
        n_, c_, d_, h_, w_ = vol.shape
        x2d = vol.transpose(0, 2, 1, 3, 4).reshape(n_ * d_, c_, h_, w_)
        y2d = unet_forward(params["unet"], x2d)
        co = y2d.shape[1]
        return y2d.reshape(n_, d_, co, h_, w_).transpose(0, 2, 1, 3, 4)

    if sliceup_first:
        _, up_images = srcnn3d_forward(params["srcnn"], images, scale_factor)
        output = run_unet(up_images)
    else:
        up_images = run_unet(images)
        _aux_out, output = srcnn3d_forward(params["srcnn"], up_images, scale_factor)
    return output


# ----------------------------------------------------------------------------
if __name__ == "__main__":
    key = jax.random.PRNGKey(0)
    kparams, kx = jax.random.split(key)

    in_channels, n_classes, depth, num_features = 1, 1, 3, 8
    scale_factor = (2, 1, 1)

    params = init_thisnewnet(kparams, in_channels, n_classes, depth, num_features)
    images = jax.random.normal(kx, (1, in_channels, 4, 16, 16), jnp.float32)  # N,C,D,H,W

    fwd = jax.jit(functools.partial(
        thisnewnet_forward, scale_factor=scale_factor, sliceup_first=False))
    out = fwd(params, images)
    jax.block_until_ready(out)

    assert out.shape == (1, n_classes, 4 * scale_factor[0], 16, 16), out.shape
    assert jnp.all(jnp.isfinite(out))
    print("KERNEL_OK")
</pallas_src>

<mosaic_0001>
module attributes {stable_mosaic.version = 11 : i64} {
  func.func @_conv2d_kernel(%arg0: i32, %arg1: i32, %arg2: memref<8x9xbf16, #tpu.memory_space<vmem>>, %arg3: memref<1x9x256xbf16, #tpu.memory_space<vmem>>, %arg4: memref<8x1xf32, #tpu.memory_space<vmem>>, %arg5: memref<1x8x256xf32, #tpu.memory_space<vmem>>) attributes {dimension_semantics = [#tpu.dimension_semantics<parallel>, #tpu.dimension_semantics<parallel>], iteration_bounds = array<i64: 4, 1>, scalar_prefetch = 0 : i64, scratch_operands = 0 : i64, tpu.core_type = #tpu.core_type<tc>, window_params = [{pipeline_mode = #tpu.pipeline_mode<synchronous>, transform_indices = @transform_0, window_bounds = array<i64: 8, 9>}, {transform_indices = @transform_1, window_bounds = array<i64: 1, 9, 256>}, {pipeline_mode = #tpu.pipeline_mode<synchronous>, transform_indices = @transform_2, window_bounds = array<i64: 8, 1>}, {transform_indices = @transform_3, window_bounds = array<i64: 1, 8, 256>}]} {
    %c0 = arith.constant 0 : index
    %c0_0 = arith.constant 0 : index
    %0 = vector.load %arg2[%c0, %c0_0] : memref<8x9xbf16, #tpu.memory_space<vmem>>, vector<8x9xbf16>
    %c0_1 = arith.constant 0 : index
    %c0_2 = arith.constant 0 : index
    %c0_3 = arith.constant 0 : index
    %1 = vector.load %arg3[%c0_1, %c0_2, %c0_3] : memref<1x9x256xbf16, #tpu.memory_space<vmem>>, vector<1x9x256xbf16>
    %2 = vector.shape_cast %1 : vector<1x9x256xbf16> to vector<9x256xbf16>
    %cst = arith.constant dense<0.000000e+00> : vector<8x256xf32>
    %3 = tpu.matmul %0, %2, %cst {dimension_numbers = #tpu.dot_dimension_numbers<[1], [0], [0], [1], [0, 0, 1, 1], [], []>} : vector<8x9xbf16>, vector<9x256xbf16>, vector<8x256xf32> -> vector<8x256xf32>
    %c0_4 = arith.constant 0 : index
    %c0_5 = arith.constant 0 : index
    %4 = vector.load %arg4[%c0_4, %c0_5] : memref<8x1xf32, #tpu.memory_space<vmem>>, vector<8x1xf32>
    %5 = vector.broadcast %4 : vector<8x1xf32> to vector<8x256xf32>
    %6 = arith.addf %3, %5 : vector<8x256xf32>
    %cst_6 = arith.constant 0.000000e+00 : f32
    %7 = vector.broadcast %cst_6 : f32 to vector<8x256xf32>
    %8 = arith.maximumf %6, %7 : vector<8x256xf32>
    %c0_7 = arith.constant 0 : index
    %c0_8 = arith.constant 0 : index
    %c0_9 = arith.constant 0 : index
    %9 = vector.load %arg5[%c0_7, %c0_8, %c0_9] : memref<1x8x256xf32, #tpu.memory_space<vmem>>, vector<1x8x256xf32>
    %10 = vector.shape_cast %9 : vector<1x8x256xf32> to vector<8x256xf32>
    %11 = vector.shape_cast %8 : vector<8x256xf32> to vector<1x8x256xf32>
    tpu.vector_store %arg5[%c0_7, %c0_8, %c0_9], %11 {strides = array<i32>} : memref<1x8x256xf32, #tpu.memory_space<vmem>>, vector<1x8x256xf32>,
    return
  }
  func.func @transform_0(%arg0: i32, %arg1: i32) -> (i32, i32) {
    %c0_i32 = arith.constant 0 : i32
    %c0_i32_0 = arith.constant 0 : i32
    %c0_i32_1 = arith.constant 0 : i32
    return %c0_i32, %c0_i32_0 : i32, i32
  }
  func.func @transform_1(%arg0: i32, %arg1: i32) -> (i32, i32, i32) {
    %c0_i32 = arith.constant 0 : i32
    %c0_i32_0 = arith.constant 0 : i32
    return %arg0, %c0_i32, %arg1 : i32, i32, i32
  }
  func.func @transform_2(%arg0: i32, %arg1: i32) -> (i32, i32) {
    %c0_i32 = arith.constant 0 : i32
    %c0_i32_0 = arith.constant 0 : i32
    %c0_i32_1 = arith.constant 0 : i32
    return %c0_i32, %c0_i32_0 : i32, i32
  }
  func.func @transform_3(%arg0: i32, %arg1: i32) -> (i32, i32, i32) {
    %c0_i32 = arith.constant 0 : i32
    %c0_i32_0 = arith.constant 0 : i32
    return %arg0, %c0_i32, %arg1 : i32, i32, i32
  }
}

module attributes {stable_mosaic.version = 11 : i64} {
  func.func @_conv2d_kernel(%arg0: i32, %arg1: i32, %arg2: memref<8x72xbf16, #tpu.memory_space<vmem>>, %arg3: memref<1x72x256xbf16, #tpu.memory_space<vmem>>, %arg4: memref<8x1xf32, #tpu.memory_space<vmem>>, %arg5: memref<1x8x256xf32, #tpu.memory_space<vmem>>) attributes {dimension_semantics = [#tpu.dimension_semantics<parallel>, #tpu.dimension_semantics<parallel>], iteration_bounds = array<i64: 4, 1>, scalar_prefetch = 0 : i64, scratch_operands = 0 : i64, tpu.core_type = #tpu.core_type<tc>, window_params = [{pipeline_mode = #tpu.pipeline_mode<synchronous>, transform_indices = @transform_0, window_bounds = array<i64: 8, 72>}, {transform_indices = @transform_1, window_bounds = array<i64: 1, 72, 256>}, {pipeline_mode = #tpu.pipeline_mode<synchronous>, transform_indices = @transform_2, window_bounds = array<i64: 8, 1>}, {transform_indices = @transform_3, window_bounds = array<i64: 1, 8, 256>}]} {
    %c0 = arith.constant 0 : index
    %c0_0 = arith.constant 0 : index
    %0 = vector.load %arg2[%c0, %c0_0] : memref<8x72xbf16, #tpu.memory_space<vmem>>, vector<8x72xbf16>
    %c0_1 = arith.constant 0 : index
    %c0_2 = arith.constant 0 : index
    %c0_3 = arith.constant 0 : index
    %1 = vector.load %arg3[%c0_1, %c0_2, %c0_3] : memref<1x72x256xbf16, #tpu.memory_space<vmem>>, vector<1x72x256xbf16>
    %2 = vector.shape_cast %1 : vector<1x72x256xbf16> to vector<72x256xbf16>
    %cst = arith.constant dense<0.000000e+00> : vector<8x256xf32>
    %3 = tpu.matmul %0, %2, %cst {dimension_numbers = #tpu.dot_dimension_numbers<[1], [0], [0], [1], [0, 0, 1, 1], [], []>} : vector<8x72xbf16>, vector<72x256xbf16>, vector<8x256xf32> -> vector<8x256xf32>
    %c0_4 = arith.constant 0 : index
    %c0_5 = arith.constant 0 : index
    %4 = vector.load %arg4[%c0_4, %c0_5] : memref<8x1xf32, #tpu.memory_space<vmem>>, vector<8x1xf32>
    %5 = vector.broadcast %4 : vector<8x1xf32> to vector<8x256xf32>
    %6 = arith.addf %3, %5 : vector<8x256xf32>
    %cst_6 = arith.constant 0.000000e+00 : f32
    %7 = vector.broadcast %cst_6 : f32 to vector<8x256xf32>
    %8 = arith.maximumf %6, %7 : vector<8x256xf32>
    %c0_7 = arith.constant 0 : index
    %c0_8 = arith.constant 0 : index
    %c0_9 = arith.constant 0 : index
    %9 = vector.load %arg5[%c0_7, %c0_8, %c0_9] : memref<1x8x256xf32, #tpu.memory_space<vmem>>, vector<1x8x256xf32>
    %10 = vector.shape_cast %9 : vector<1x8x256xf32> to vector<8x256xf32>
    %11 = vector.shape_cast %8 : vector<8x256xf32> to vector<1x8x256xf32>
    tpu.vector_store %arg5[%c0_7, %c0_8, %c0_9], %11 {strides = array<i32>} : memref<1x8x256xf32, #tpu.memory_space<vmem>>, vector<1x8x256xf32>,
    return
  }
  func.func @transform_0(%arg0: i32, %arg1: i32) -> (i32, i32) {
    %c0_i32 = arith.constant 0 : i32
    %c0_i32_0 = arith.constant 0 : i32
    %c0_i32_1 = arith.constant 0 : i32
    return %c0_i32, %c0_i32_0 : i32, i32
  }
  func.func @transform_1(%arg0: i32, %arg1: i32) -> (i32, i32, i32) {
    %c0_i32 = arith.constant 0 : i32
    %c0_i32_0 = arith.constant 0 : i32
    return %arg0, %c0_i32, %arg1 : i32, i32, i32
  }
  func.func @transform_2(%arg0: i32, %arg1: i32) -> (i32, i32) {
    %c0_i32 = arith.constant 0 : i32
    %c0_i32_0 = arith.constant 0 : i32
    %c0_i32_1 = arith.constant 0 : i32
    return %c0_i32, %c0_i32_0 : i32, i32
  }
  func.func @transform_3(%arg0: i32, %arg1: i32) -> (i32, i32, i32) {
    %c0_i32 = arith.constant 0 : i32
    %c0_i32_0 = arith.constant 0 : i32
    return %arg0, %c0_i32, %arg1 : i32, i32, i32
  }
}

module attributes {stable_mosaic.version = 11 : i64} {
  func.func @_conv2d_kernel(%arg0: i32, %arg1: i32, %arg2: memref<16x72xbf16, #tpu.memory_space<vmem>>, %arg3: memref<1x72x64xbf16, #tpu.memory_space<vmem>>, %arg4: memref<16x1xf32, #tpu.memory_space<vmem>>, %arg5: memref<1x16x64xf32, #tpu.memory_space<vmem>>) attributes {dimension_semantics = [#tpu.dimension_semantics<parallel>, #tpu.dimension_semantics<parallel>], iteration_bounds = array<i64: 4, 1>, scalar_prefetch = 0 : i64, scratch_operands = 0 : i64, tpu.core_type = #tpu.core_type<tc>, window_params = [{pipeline_mode = #tpu.pipeline_mode<synchronous>, transform_indices = @transform_0, window_bounds = array<i64: 16, 72>}, {transform_indices = @transform_1, window_bounds = array<i64: 1, 72, 64>}, {pipeline_mode = #tpu.pipeline_mode<synchronous>, transform_indices = @transform_2, window_bounds = array<i64: 16, 1>}, {transform_indices = @transform_3, window_bounds = array<i64: 1, 16, 64>}]} {
    %c0 = arith.constant 0 : index
    %c0_0 = arith.constant 0 : index
    %0 = vector.load %arg2[%c0, %c0_0] : memref<16x72xbf16, #tpu.memory_space<vmem>>, vector<16x72xbf16>
    %c0_1 = arith.constant 0 : index
    %c0_2 = arith.constant 0 : index
    %c0_3 = arith.constant 0 : index
    %1 = vector.load %arg3[%c0_1, %c0_2, %c0_3] : memref<1x72x64xbf16, #tpu.memory_space<vmem>>, vector<1x72x64xbf16>
    %2 = vector.shape_cast %1 : vector<1x72x64xbf16> to vector<72x64xbf16>
    %cst = arith.constant dense<0.000000e+00> : vector<16x64xf32>
    %3 = tpu.matmul %0, %2, %cst {dimension_numbers = #tpu.dot_dimension_numbers<[1], [0], [0], [1], [0, 0, 1, 1], [], []>} : vector<16x72xbf16>, vector<72x64xbf16>, vector<16x64xf32> -> vector<16x64xf32>
    %c0_4 = arith.constant 0 : index
    %c0_5 = arith.constant 0 : index
    %4 = vector.load %arg4[%c0_4, %c0_5] : memref<16x1xf32, #tpu.memory_space<vmem>>, vector<16x1xf32>
    %5 = vector.broadcast %4 : vector<16x1xf32> to vector<16x64xf32>
    %6 = arith.addf %3, %5 : vector<16x64xf32>
    %cst_6 = arith.constant 0.000000e+00 : f32
    %7 = vector.broadcast %cst_6 : f32 to vector<16x64xf32>
    %8 = arith.maximumf %6, %7 : vector<16x64xf32>
    %c0_7 = arith.constant 0 : index
    %c0_8 = arith.constant 0 : index
    %c0_9 = arith.constant 0 : index
    %9 = vector.load %arg5[%c0_7, %c0_8, %c0_9] : memref<1x16x64xf32, #tpu.memory_space<vmem>>, vector<1x16x64xf32>
    %10 = vector.shape_cast %9 : vector<1x16x64xf32> to vector<16x64xf32>
    %11 = vector.shape_cast %8 : vector<16x64xf32> to vector<1x16x64xf32>
    tpu.vector_store %arg5[%c0_7, %c0_8, %c0_9], %11 {strides = array<i32>} : memref<1x16x64xf32, #tpu.memory_space<vmem>>, vector<1x16x64xf32>,
    return
  }
  func.func @transform_0(%arg0: i32, %arg1: i32) -> (i32, i32) {
    %c0_i32 = arith.constant 0 : i32
    %c0_i32_0 = arith.constant 0 : i32
    %c0_i32_1 = arith.constant 0 : i32
    return %c0_i32, %c0_i32_0 : i32, i32
  }
  func.func @transform_1(%arg0: i32, %arg1: i32) -> (i32, i32, i32) {
    %c0_i32 = arith.constant 0 : i32
    %c0_i32_0 = arith.constant 0 : i32
    return %arg0, %c0_i32, %arg1 : i32, i32, i32
  }
  func.func @transform_2(%arg0: i32, %arg1: i32) -> (i32, i32) {
    %c0_i32 = arith.constant 0 : i32
    %c0_i32_0 = arith.constant 0 : i32
    %c0_i32_1 = arith.constant 0 : i32
    return %c0_i32, %c0_i32_0 : i32, i32
  }
  func.func @transform_3(%arg0: i32, %arg1: i32) -> (i32, i32, i32) {
    %c0_i32 = arith.constant 0 : i32
    %c0_i32_0 = arith.constant 0 : i32
    return %arg0, %c0_i32, %arg1 : i32, i32, i32
  }
}

module attributes {stable_mosaic.version = 11 : i64} {
  func.func @_conv2d_kernel(%arg0: i32, %arg1: i32, %arg2: memref<16x144xbf16, #tpu.memory_space<vmem>>, %arg3: memref<1x144x64xbf16, #tpu.memory_space<vmem>>, %arg4: memref<16x1xf32, #tpu.memory_space<vmem>>, %arg5: memref<1x16x64xf32, #tpu.memory_space<vmem>>) attributes {dimension_semantics = [#tpu.dimension_semantics<parallel>, #tpu.dimension_semantics<parallel>], iteration_bounds = array<i64: 4, 1>, scalar_prefetch = 0 : i64, scratch_operands = 0 : i64, tpu.core_type = #tpu.core_type<tc>, window_params = [{pipeline_mode = #tpu.pipeline_mode<synchronous>, transform_indices = @transform_0, window_bounds = array<i64: 16, 144>}, {transform_indices = @transform_1, window_bounds = array<i64: 1, 144, 64>}, {pipeline_mode = #tpu.pipeline_mode<synchronous>, transform_indices = @transform_2, window_bounds = array<i64: 16, 1>}, {transform_indices = @transform_3, window_bounds = array<i64: 1, 16, 64>}]} {
    %c0 = arith.constant 0 : index
    %c0_0 = arith.constant 0 : index
    %0 = vector.load %arg2[%c0, %c0_0] : memref<16x144xbf16, #tpu.memory_space<vmem>>, vector<16x144xbf16>
    %c0_1 = arith.constant 0 : index
    %c0_2 = arith.constant 0 : index
    %c0_3 = arith.constant 0 : index
    %1 = vector.load %arg3[%c0_1, %c0_2, %c0_3] : memref<1x144x64xbf16, #tpu.memory_space<vmem>>, vector<1x144x64xbf16>
    %2 = vector.shape_cast %1 : vector<1x144x64xbf16> to vector<144x64xbf16>
    %cst = arith.constant dense<0.000000e+00> : vector<16x64xf32>
    %3 = tpu.matmul %0, %2, %cst {dimension_numbers = #tpu.dot_dimension_numbers<[1], [0], [0], [1], [0, 0, 1, 1], [], []>} : vector<16x144xbf16>, vector<144x64xbf16>, vector<16x64xf32> -> vector<16x64xf32>
    %c0_4 = arith.constant 0 : index
    %c0_5 = arith.constant 0 : index
    %4 = vector.load %arg4[%c0_4, %c0_5] : memref<16x1xf32, #tpu.memory_space<vmem>>, vector<16x1xf32>
    %5 = vector.broadcast %4 : vector<16x1xf32> to vector<16x64xf32>
    %6 = arith.addf %3, %5 : vector<16x64xf32>
    %cst_6 = arith.constant 0.000000e+00 : f32
    %7 = vector.broadcast %cst_6 : f32 to vector<16x64xf32>
    %8 = arith.maximumf %6, %7 : vector<16x64xf32>
    %c0_7 = arith.constant 0 : index
    %c0_8 = arith.constant 0 : index
    %c0_9 = arith.constant 0 : index
    %9 = vector.load %arg5[%c0_7, %c0_8, %c0_9] : memref<1x16x64xf32, #tpu.memory_space<vmem>>, vector<1x16x64xf32>
    %10 = vector.shape_cast %9 : vector<1x16x64xf32> to vector<16x64xf32>
    %11 = vector.shape_cast %8 : vector<16x64xf32> to vector<1x16x64xf32>
    tpu.vector_store %arg5[%c0_7, %c0_8, %c0_9], %11 {strides = array<i32>} : memref<1x16x64xf32, #tpu.memory_space<vmem>>, vector<1x16x64xf32>,
    return
  }
  func.func @transform_0(%arg0: i32, %arg1: i32) -> (i32, i32) {
    %c0_i32 = arith.constant 0 : i32
    %c0_i32_0 = arith.constant 0 : i32
    %c0_i32_1 = arith.constant 0 : i32
    return %c0_i32, %c0_i32_0 : i32, i32
  }
  func.func @transform_1(%arg0: i32, %arg1: i32) -> (i32, i32, i32) {
    %c0_i32 = arith.constant 0 : i32
    %c0_i32_0 = arith.constant 0 : i32
    return %arg0, %c0_i32, %arg1 : i32, i32, i32
  }
  func.func @transform_2(%arg0: i32, %arg1: i32) -> (i32, i32) {
    %c0_i32 = arith.constant 0 : i32
    %c0_i32_0 = arith.constant 0 : i32
    %c0_i32_1 = arith.constant 0 : i32
    return %c0_i32, %c0_i32_0 : i32, i32
  }
  func.func @transform_3(%arg0: i32, %arg1: i32) -> (i32, i32, i32) {
    %c0_i32 = arith.constant 0 : i32
    %c0_i32_0 = arith.constant 0 : i32
    return %arg0, %c0_i32, %arg1 : i32, i32, i32
  }
}

module attributes {stable_mosaic.version = 11 : i64} {
  func.func @_conv2d_kernel(%arg0: i32, %arg1: i32, %arg2: memref<32x144xbf16, #tpu.memory_space<vmem>>, %arg3: memref<1x144x16xbf16, #tpu.memory_space<vmem>>, %arg4: memref<32x1xf32, #tpu.memory_space<vmem>>, %arg5: memref<1x32x16xf32, #tpu.memory_space<vmem>>) attributes {dimension_semantics = [#tpu.dimension_semantics<parallel>, #tpu.dimension_semantics<parallel>], iteration_bounds = array<i64: 4, 1>, scalar_prefetch = 0 : i64, scratch_operands = 0 : i64, tpu.core_type = #tpu.core_type<tc>, window_params = [{pipeline_mode = #tpu.pipeline_mode<synchronous>, transform_indices = @transform_0, window_bounds = array<i64: 32, 144>}, {transform_indices = @transform_1, window_bounds = array<i64: 1, 144, 16>}, {pipeline_mode = #tpu.pipeline_mode<synchronous>, transform_indices = @transform_2, window_bounds = array<i64: 32, 1>}, {transform_indices = @transform_3, window_bounds = array<i64: 1, 32, 16>}]} {
    %c0 = arith.constant 0 : index
    %c0_0 = arith.constant 0 : index
    %0 = vector.load %arg2[%c0, %c0_0] : memref<32x144xbf16, #tpu.memory_space<vmem>>, vector<32x144xbf16>
    %c0_1 = arith.constant 0 : index
    %c0_2 = arith.constant 0 : index
    %c0_3 = arith.constant 0 : index
    %1 = vector.load %arg3[%c0_1, %c0_2, %c0_3] : memref<1x144x16xbf16, #tpu.memory_space<vmem>>, vector<1x144x16xbf16>
    %2 = vector.shape_cast %1 : vector<1x144x16xbf16> to vector<144x16xbf16>
    %cst = arith.constant dense<0.000000e+00> : vector<32x16xf32>
    %3 = tpu.matmul %0, %2, %cst {dimension_numbers = #tpu.dot_dimension_numbers<[1], [0], [0], [1], [0, 0, 1, 1], [], []>} : vector<32x144xbf16>, vector<144x16xbf16>, vector<32x16xf32> -> vector<32x16xf32>
    %c0_4 = arith.constant 0 : index
    %c0_5 = arith.constant 0 : index
    %4 = vector.load %arg4[%c0_4, %c0_5] : memref<32x1xf32, #tpu.memory_space<vmem>>, vector<32x1xf32>
    %5 = vector.broadcast %4 : vector<32x1xf32> to vector<32x16xf32>
    %6 = arith.addf %3, %5 : vector<32x16xf32>
    %cst_6 = arith.constant 0.000000e+00 : f32
    %7 = vector.broadcast %cst_6 : f32 to vector<32x16xf32>
    %8 = arith.maximumf %6, %7 : vector<32x16xf32>
    %c0_7 = arith.constant 0 : index
    %c0_8 = arith.constant 0 : index
    %c0_9 = arith.constant 0 : index
    %9 = vector.load %arg5[%c0_7, %c0_8, %c0_9] : memref<1x32x16xf32, #tpu.memory_space<vmem>>, vector<1x32x16xf32>
    %10 = vector.shape_cast %9 : vector<1x32x16xf32> to vector<32x16xf32>
    %11 = vector.shape_cast %8 : vector<32x16xf32> to vector<1x32x16xf32>
    tpu.vector_store %arg5[%c0_7, %c0_8, %c0_9], %11 {strides = array<i32>} : memref<1x32x16xf32, #tpu.memory_space<vmem>>, vector<1x32x16xf32>,
    return
  }
  func.func @transform_0(%arg0: i32, %arg1: i32) -> (i32, i32) {
    %c0_i32 = arith.constant 0 : i32
    %c0_i32_0 = arith.constant 0 : i32
    %c0_i32_1 = arith.constant 0 : i32
    return %c0_i32, %c0_i32_0 : i32, i32
  }
  func.func @transform_1(%arg0: i32, %arg1: i32) -> (i32, i32, i32) {
    %c0_i32 = arith.constant 0 : i32
    %c0_i32_0 = arith.constant 0 : i32
    return %arg0, %c0_i32, %arg1 : i32, i32, i32
  }
  func.func @transform_2(%arg0: i32, %arg1: i32) -> (i32, i32) {
    %c0_i32 = arith.constant 0 : i32
    %c0_i32_0 = arith.constant 0 : i32
    %c0_i32_1 = arith.constant 0 : i32
    return %c0_i32, %c0_i32_0 : i32, i32
  }
  func.func @transform_3(%arg0: i32, %arg1: i32) -> (i32, i32, i32) {
    %c0_i32 = arith.constant 0 : i32
    %c0_i32_0 = arith.constant 0 : i32
    return %arg0, %c0_i32, %arg1 : i32, i32, i32
  }
}

module attributes {stable_mosaic.version = 11 : i64} {
  func.func @_conv2d_kernel(%arg0: i32, %arg1: i32, %arg2: memref<32x288xbf16, #tpu.memory_space<vmem>>, %arg3: memref<1x288x16xbf16, #tpu.memory_space<vmem>>, %arg4: memref<32x1xf32, #tpu.memory_space<vmem>>, %arg5: memref<1x32x16xf32, #tpu.memory_space<vmem>>) attributes {dimension_semantics = [#tpu.dimension_semantics<parallel>, #tpu.dimension_semantics<parallel>], iteration_bounds = array<i64: 4, 1>, scalar_prefetch = 0 : i64, scratch_operands = 0 : i64, tpu.core_type = #tpu.core_type<tc>, window_params = [{pipeline_mode = #tpu.pipeline_mode<synchronous>, transform_indices = @transform_0, window_bounds = array<i64: 32, 288>}, {transform_indices = @transform_1, window_bounds = array<i64: 1, 288, 16>}, {pipeline_mode = #tpu.pipeline_mode<synchronous>, transform_indices = @transform_2, window_bounds = array<i64: 32, 1>}, {transform_indices = @transform_3, window_bounds = array<i64: 1, 32, 16>}]} {
    %c0 = arith.constant 0 : index
    %c0_0 = arith.constant 0 : index
    %0 = vector.load %arg2[%c0, %c0_0] : memref<32x288xbf16, #tpu.memory_space<vmem>>, vector<32x288xbf16>
    %c0_1 = arith.constant 0 : index
    %c0_2 = arith.constant 0 : index
    %c0_3 = arith.constant 0 : index
    %1 = vector.load %arg3[%c0_1, %c0_2, %c0_3] : memref<1x288x16xbf16, #tpu.memory_space<vmem>>, vector<1x288x16xbf16>
    %2 = vector.shape_cast %1 : vector<1x288x16xbf16> to vector<288x16xbf16>
    %cst = arith.constant dense<0.000000e+00> : vector<32x16xf32>
    %3 = tpu.matmul %0, %2, %cst {dimension_numbers = #tpu.dot_dimension_numbers<[1], [0], [0], [1], [0, 0, 1, 1], [], []>} : vector<32x288xbf16>, vector<288x16xbf16>, vector<32x16xf32> -> vector<32x16xf32>
    %c0_4 = arith.constant 0 : index
    %c0_5 = arith.constant 0 : index
    %4 = vector.load %arg4[%c0_4, %c0_5] : memref<32x1xf32, #tpu.memory_space<vmem>>, vector<32x1xf32>
    %5 = vector.broadcast %4 : vector<32x1xf32> to vector<32x16xf32>
    %6 = arith.addf %3, %5 : vector<32x16xf32>
    %cst_6 = arith.constant 0.000000e+00 : f32
    %7 = vector.broadcast %cst_6 : f32 to vector<32x16xf32>
    %8 = arith.maximumf %6, %7 : vector<32x16xf32>
    %c0_7 = arith.constant 0 : index
    %c0_8 = arith.constant 0 : index
    %c0_9 = arith.constant 0 : index
    %9 = vector.load %arg5[%c0_7, %c0_8, %c0_9] : memref<1x32x16xf32, #tpu.memory_space<vmem>>, vector<1x32x16xf32>
    %10 = vector.shape_cast %9 : vector<1x32x16xf32> to vector<32x16xf32>
    %11 = vector.shape_cast %8 : vector<32x16xf32> to vector<1x32x16xf32>
    tpu.vector_store %arg5[%c0_7, %c0_8, %c0_9], %11 {strides = array<i32>} : memref<1x32x16xf32, #tpu.memory_space<vmem>>, vector<1x32x16xf32>,
    return
  }
  func.func @transform_0(%arg0: i32, %arg1: i32) -> (i32, i32) {
    %c0_i32 = arith.constant 0 : i32
    %c0_i32_0 = arith.constant 0 : i32
    %c0_i32_1 = arith.constant 0 : i32
    return %c0_i32, %c0_i32_0 : i32, i32
  }
  func.func @transform_1(%arg0: i32, %arg1: i32) -> (i32, i32, i32) {
    %c0_i32 = arith.constant 0 : i32
    %c0_i32_0 = arith.constant 0 : i32
    return %arg0, %c0_i32, %arg1 : i32, i32, i32
  }
  func.func @transform_2(%arg0: i32, %arg1: i32) -> (i32, i32) {
    %c0_i32 = arith.constant 0 : i32
    %c0_i32_0 = arith.constant 0 : i32
    %c0_i32_1 = arith.constant 0 : i32
    return %c0_i32, %c0_i32_0 : i32, i32
  }
  func.func @transform_3(%arg0: i32, %arg1: i32) -> (i32, i32, i32) {
    %c0_i32 = arith.constant 0 : i32
    %c0_i32_0 = arith.constant 0 : i32
    return %arg0, %c0_i32, %arg1 : i32, i32, i32
  }
}

module attributes {stable_mosaic.version = 11 : i64} {
  func.func @_conv2d_kernel(%arg0: i32, %arg1: i32, %arg2: memref<16x32xbf16, #tpu.memory_space<vmem>>, %arg3: memref<1x32x64xbf16, #tpu.memory_space<vmem>>, %arg4: memref<16x1xf32, #tpu.memory_space<vmem>>, %arg5: memref<1x16x64xf32, #tpu.memory_space<vmem>>) attributes {dimension_semantics = [#tpu.dimension_semantics<parallel>, #tpu.dimension_semantics<parallel>], iteration_bounds = array<i64: 4, 1>, scalar_prefetch = 0 : i64, scratch_operands = 0 : i64, tpu.core_type = #tpu.core_type<tc>, window_params = [{pipeline_mode = #tpu.pipeline_mode<synchronous>, transform_indices = @transform_0, window_bounds = array<i64: 16, 32>}, {transform_indices = @transform_1, window_bounds = array<i64: 1, 32, 64>}, {pipeline_mode = #tpu.pipeline_mode<synchronous>, transform_indices = @transform_2, window_bounds = array<i64: 16, 1>}, {transform_indices = @transform_3, window_bounds = array<i64: 1, 16, 64>}]} {
    %c0 = arith.constant 0 : index
    %c0_0 = arith.constant 0 : index
    %0 = vector.load %arg2[%c0, %c0_0] : memref<16x32xbf16, #tpu.memory_space<vmem>>, vector<16x32xbf16>
    %c0_1 = arith.constant 0 : index
    %c0_2 = arith.constant 0 : index
    %c0_3 = arith.constant 0 : index
    %1 = vector.load %arg3[%c0_1, %c0_2, %c0_3] : memref<1x32x64xbf16, #tpu.memory_space<vmem>>, vector<1x32x64xbf16>
    %2 = vector.shape_cast %1 : vector<1x32x64xbf16> to vector<32x64xbf16>
    %cst = arith.constant dense<0.000000e+00> : vector<16x64xf32>
    %3 = tpu.matmul %0, %2, %cst {dimension_numbers = #tpu.dot_dimension_numbers<[1], [0], [0], [1], [0, 0, 1, 1], [], []>} : vector<16x32xbf16>, vector<32x64xbf16>, vector<16x64xf32> -> vector<16x64xf32>
    %c0_4 = arith.constant 0 : index
    %c0_5 = arith.constant 0 : index
    %4 = vector.load %arg4[%c0_4, %c0_5] : memref<16x1xf32, #tpu.memory_space<vmem>>, vector<16x1xf32>
    %5 = vector.broadcast %4 : vector<16x1xf32> to vector<16x64xf32>
    %6 = arith.addf %3, %5 : vector<16x64xf32>
    %c0_6 = arith.constant 0 : index
    %c0_7 = arith.constant 0 : index
    %c0_8 = arith.constant 0 : index
    %7 = vector.load %arg5[%c0_6, %c0_7, %c0_8] : memref<1x16x64xf32, #tpu.memory_space<vmem>>, vector<1x16x64xf32>
    %8 = vector.shape_cast %7 : vector<1x16x64xf32> to vector<16x64xf32>
    %9 = vector.shape_cast %6 : vector<16x64xf32> to vector<1x16x64xf32>
    tpu.vector_store %arg5[%c0_6, %c0_7, %c0_8], %9 {strides = array<i32>} : memref<1x16x64xf32, #tpu.memory_space<vmem>>, vector<1x16x64xf32>,
    return
  }
  func.func @transform_0(%arg0: i32, %arg1: i32) -> (i32, i32) {
    %c0_i32 = arith.constant 0 : i32
    %c0_i32_0 = arith.constant 0 : i32
    %c0_i32_1 = arith.constant 0 : i32
    return %c0_i32, %c0_i32_0 : i32, i32
  }
  func.func @transform_1(%arg0: i32, %arg1: i32) -> (i32, i32, i32) {
    %c0_i32 = arith.constant 0 : i32
    %c0_i32_0 = arith.constant 0 : i32
    return %arg0, %c0_i32, %arg1 : i32, i32, i32
  }
  func.func @transform_2(%arg0: i32, %arg1: i32) -> (i32, i32) {
    %c0_i32 = arith.constant 0 : i32
    %c0_i32_0 = arith.constant 0 : i32
    %c0_i32_1 = arith.constant 0 : i32
    return %c0_i32, %c0_i32_0 : i32, i32
  }
  func.func @transform_3(%arg0: i32, %arg1: i32) -> (i32, i32, i32) {
    %c0_i32 = arith.constant 0 : i32
    %c0_i32_0 = arith.constant 0 : i32
    return %arg0, %c0_i32, %arg1 : i32, i32, i32
  }
}

module attributes {stable_mosaic.version = 11 : i64} {
  func.func @_conv2d_kernel(%arg0: i32, %arg1: i32, %arg2: memref<16x288xbf16, #tpu.memory_space<vmem>>, %arg3: memref<1x288x64xbf16, #tpu.memory_space<vmem>>, %arg4: memref<16x1xf32, #tpu.memory_space<vmem>>, %arg5: memref<1x16x64xf32, #tpu.memory_space<vmem>>) attributes {dimension_semantics = [#tpu.dimension_semantics<parallel>, #tpu.dimension_semantics<parallel>], iteration_bounds = array<i64: 4, 1>, scalar_prefetch = 0 : i64, scratch_operands = 0 : i64, tpu.core_type = #tpu.core_type<tc>, window_params = [{pipeline_mode = #tpu.pipeline_mode<synchronous>, transform_indices = @transform_0, window_bounds = array<i64: 16, 288>}, {transform_indices = @transform_1, window_bounds = array<i64: 1, 288, 64>}, {pipeline_mode = #tpu.pipeline_mode<synchronous>, transform_indices = @transform_2, window_bounds = array<i64: 16, 1>}, {transform_indices = @transform_3, window_bounds = array<i64: 1, 16, 64>}]} {
    %c0 = arith.constant 0 : index
    %c0_0 = arith.constant 0 : index
    %0 = vector.load %arg2[%c0, %c0_0] : memref<16x288xbf16, #tpu.memory_space<vmem>>, vector<16x288xbf16>
    %c0_1 = arith.constant 0 : index
    %c0_2 = arith.constant 0 : index
    %c0_3 = arith.constant 0 : index
    %1 = vector.load %arg3[%c0_1, %c0_2, %c0_3] : memref<1x288x64xbf16, #tpu.memory_space<vmem>>, vector<1x288x64xbf16>
    %2 = vector.shape_cast %1 : vector<1x288x64xbf16> to vector<288x64xbf16>
    %cst = arith.constant dense<0.000000e+00> : vector<16x64xf32>
    %3 = tpu.matmul %0, %2, %cst {dimension_numbers = #tpu.dot_dimension_numbers<[1], [0], [0], [1], [0, 0, 1, 1], [], []>} : vector<16x288xbf16>, vector<288x64xbf16>, vector<16x64xf32> -> vector<16x64xf32>
    %c0_4 = arith.constant 0 : index
    %c0_5 = arith.constant 0 : index
    %4 = vector.load %arg4[%c0_4, %c0_5] : memref<16x1xf32, #tpu.memory_space<vmem>>, vector<16x1xf32>
    %5 = vector.broadcast %4 : vector<16x1xf32> to vector<16x64xf32>
    %6 = arith.addf %3, %5 : vector<16x64xf32>
    %cst_6 = arith.constant 0.000000e+00 : f32
    %7 = vector.broadcast %cst_6 : f32 to vector<16x64xf32>
    %8 = arith.maximumf %6, %7 : vector<16x64xf32>
    %c0_7 = arith.constant 0 : index
    %c0_8 = arith.constant 0 : index
    %c0_9 = arith.constant 0 : index
    %9 = vector.load %arg5[%c0_7, %c0_8, %c0_9] : memref<1x16x64xf32, #tpu.memory_space<vmem>>, vector<1x16x64xf32>
    %10 = vector.shape_cast %9 : vector<1x16x64xf32> to vector<16x64xf32>
    %11 = vector.shape_cast %8 : vector<16x64xf32> to vector<1x16x64xf32>
    tpu.vector_store %arg5[%c0_7, %c0_8, %c0_9], %11 {strides = array<i32>} : memref<1x16x64xf32, #tpu.memory_space<vmem>>, vector<1x16x64xf32>,
    return
  }
  func.func @transform_0(%arg0: i32, %arg1: i32) -> (i32, i32) {
    %c0_i32 = arith.constant 0 : i32
    %c0_i32_0 = arith.constant 0 : i32
    %c0_i32_1 = arith.constant 0 : i32
    return %c0_i32, %c0_i32_0 : i32, i32
  }
  func.func @transform_1(%arg0: i32, %arg1: i32) -> (i32, i32, i32) {
    %c0_i32 = arith.constant 0 : i32
    %c0_i32_0 = arith.constant 0 : i32
    return %arg0, %c0_i32, %arg1 : i32, i32, i32
  }
  func.func @transform_2(%arg0: i32, %arg1: i32) -> (i32, i32) {
    %c0_i32 = arith.constant 0 : i32
    %c0_i32_0 = arith.constant 0 : i32
    %c0_i32_1 = arith.constant 0 : i32
    return %c0_i32, %c0_i32_0 : i32, i32
  }
  func.func @transform_3(%arg0: i32, %arg1: i32) -> (i32, i32, i32) {
    %c0_i32 = arith.constant 0 : i32
    %c0_i32_0 = arith.constant 0 : i32
    return %arg0, %c0_i32, %arg1 : i32, i32, i32
  }
}

module attributes {stable_mosaic.version = 11 : i64} {
  func.func @_conv2d_kernel(%arg0: i32, %arg1: i32, %arg2: memref<8x16xbf16, #tpu.memory_space<vmem>>, %arg3: memref<1x16x256xbf16, #tpu.memory_space<vmem>>, %arg4: memref<8x1xf32, #tpu.memory_space<vmem>>, %arg5: memref<1x8x256xf32, #tpu.memory_space<vmem>>) attributes {dimension_semantics = [#tpu.dimension_semantics<parallel>, #tpu.dimension_semantics<parallel>], iteration_bounds = array<i64: 4, 1>, scalar_prefetch = 0 : i64, scratch_operands = 0 : i64, tpu.core_type = #tpu.core_type<tc>, window_params = [{pipeline_mode = #tpu.pipeline_mode<synchronous>, transform_indices = @transform_0, window_bounds = array<i64: 8, 16>}, {transform_indices = @transform_1, window_bounds = array<i64: 1, 16, 256>}, {pipeline_mode = #tpu.pipeline_mode<synchronous>, transform_indices = @transform_2, window_bounds = array<i64: 8, 1>}, {transform_indices = @transform_3, window_bounds = array<i64: 1, 8, 256>}]} {
    %c0 = arith.constant 0 : index
    %c0_0 = arith.constant 0 : index
    %0 = vector.load %arg2[%c0, %c0_0] : memref<8x16xbf16, #tpu.memory_space<vmem>>, vector<8x16xbf16>
    %c0_1 = arith.constant 0 : index
    %c0_2 = arith.constant 0 : index
    %c0_3 = arith.constant 0 : index
    %1 = vector.load %arg3[%c0_1, %c0_2, %c0_3] : memref<1x16x256xbf16, #tpu.memory_space<vmem>>, vector<1x16x256xbf16>
    %2 = vector.shape_cast %1 : vector<1x16x256xbf16> to vector<16x256xbf16>
    %cst = arith.constant dense<0.000000e+00> : vector<8x256xf32>
    %3 = tpu.matmul %0, %2, %cst {dimension_numbers = #tpu.dot_dimension_numbers<[1], [0], [0], [1], [0, 0, 1, 1], [], []>} : vector<8x16xbf16>, vector<16x256xbf16>, vector<8x256xf32> -> vector<8x256xf32>
    %c0_4 = arith.constant 0 : index
    %c0_5 = arith.constant 0 : index
    %4 = vector.load %arg4[%c0_4, %c0_5] : memref<8x1xf32, #tpu.memory_space<vmem>>, vector<8x1xf32>
    %5 = vector.broadcast %4 : vector<8x1xf32> to vector<8x256xf32>
    %6 = arith.addf %3, %5 : vector<8x256xf32>
    %c0_6 = arith.constant 0 : index
    %c0_7 = arith.constant 0 : index
    %c0_8 = arith.constant 0 : index
    %7 = vector.load %arg5[%c0_6, %c0_7, %c0_8] : memref<1x8x256xf32, #tpu.memory_space<vmem>>, vector<1x8x256xf32>
    %8 = vector.shape_cast %7 : vector<1x8x256xf32> to vector<8x256xf32>
    %9 = vector.shape_cast %6 : vector<8x256xf32> to vector<1x8x256xf32>
    tpu.vector_store %arg5[%c0_6, %c0_7, %c0_8], %9 {strides = array<i32>} : memref<1x8x256xf32, #tpu.memory_space<vmem>>, vector<1x8x256xf32>,
    return
  }
  func.func @transform_0(%arg0: i32, %arg1: i32) -> (i32, i32) {
    %c0_i32 = arith.constant 0 : i32
    %c0_i32_0 = arith.constant 0 : i32
    %c0_i32_1 = arith.constant 0 : i32
    return %c0_i32, %c0_i32_0 : i32, i32
  }
  func.func @transform_1(%arg0: i32, %arg1: i32) -> (i32, i32, i32) {
    %c0_i32 = arith.constant 0 : i32
    %c0_i32_0 = arith.constant 0 : i32
    return %arg0, %c0_i32, %arg1 : i32, i32, i32
  }
  func.func @transform_2(%arg0: i32, %arg1: i32) -> (i32, i32) {
    %c0_i32 = arith.constant 0 : i32
    %c0_i32_0 = arith.constant 0 : i32
    %c0_i32_1 = arith.constant 0 : i32
    return %c0_i32, %c0_i32_0 : i32, i32
  }
  func.func @transform_3(%arg0: i32, %arg1: i32) -> (i32, i32, i32) {
    %c0_i32 = arith.constant 0 : i32
    %c0_i32_0 = arith.constant 0 : i32
    return %arg0, %c0_i32, %arg1 : i32, i32, i32
  }
}

module attributes {stable_mosaic.version = 11 : i64} {
  func.func @_conv2d_kernel(%arg0: i32, %arg1: i32, %arg2: memref<8x144xbf16, #tpu.memory_space<vmem>>, %arg3: memref<1x144x256xbf16, #tpu.memory_space<vmem>>, %arg4: memref<8x1xf32, #tpu.memory_space<vmem>>, %arg5: memref<1x8x256xf32, #tpu.memory_space<vmem>>) attributes {dimension_semantics = [#tpu.dimension_semantics<parallel>, #tpu.dimension_semantics<parallel>], iteration_bounds = array<i64: 4, 1>, scalar_prefetch = 0 : i64, scratch_operands = 0 : i64, tpu.core_type = #tpu.core_type<tc>, window_params = [{pipeline_mode = #tpu.pipeline_mode<synchronous>, transform_indices = @transform_0, window_bounds = array<i64: 8, 144>}, {transform_indices = @transform_1, window_bounds = array<i64: 1, 144, 256>}, {pipeline_mode = #tpu.pipeline_mode<synchronous>, transform_indices = @transform_2, window_bounds = array<i64: 8, 1>}, {transform_indices = @transform_3, window_bounds = array<i64: 1, 8, 256>}]} {
    %c0 = arith.constant 0 : index
    %c0_0 = arith.constant 0 : index
    %0 = vector.load %arg2[%c0, %c0_0] : memref<8x144xbf16, #tpu.memory_space<vmem>>, vector<8x144xbf16>
    %c0_1 = arith.constant 0 : index
    %c0_2 = arith.constant 0 : index
    %c0_3 = arith.constant 0 : index
    %1 = vector.load %arg3[%c0_1, %c0_2, %c0_3] : memref<1x144x256xbf16, #tpu.memory_space<vmem>>, vector<1x144x256xbf16>
    %2 = vector.shape_cast %1 : vector<1x144x256xbf16> to vector<144x256xbf16>
    %cst = arith.constant dense<0.000000e+00> : vector<8x256xf32>
    %3 = tpu.matmul %0, %2, %cst {dimension_numbers = #tpu.dot_dimension_numbers<[1], [0], [0], [1], [0, 0, 1, 1], [], []>} : vector<8x144xbf16>, vector<144x256xbf16>, vector<8x256xf32> -> vector<8x256xf32>
    %c0_4 = arith.constant 0 : index
    %c0_5 = arith.constant 0 : index
    %4 = vector.load %arg4[%c0_4, %c0_5] : memref<8x1xf32, #tpu.memory_space<vmem>>, vector<8x1xf32>
    %5 = vector.broadcast %4 : vector<8x1xf32> to vector<8x256xf32>
    %6 = arith.addf %3, %5 : vector<8x256xf32>
    %cst_6 = arith.constant 0.000000e+00 : f32
    %7 = vector.broadcast %cst_6 : f32 to vector<8x256xf32>
    %8 = arith.maximumf %6, %7 : vector<8x256xf32>
    %c0_7 = arith.constant 0 : index
    %c0_8 = arith.constant 0 : index
    %c0_9 = arith.constant 0 : index
    %9 = vector.load %arg5[%c0_7, %c0_8, %c0_9] : memref<1x8x256xf32, #tpu.memory_space<vmem>>, vector<1x8x256xf32>
    %10 = vector.shape_cast %9 : vector<1x8x256xf32> to vector<8x256xf32>
    %11 = vector.shape_cast %8 : vector<8x256xf32> to vector<1x8x256xf32>
    tpu.vector_store %arg5[%c0_7, %c0_8, %c0_9], %11 {strides = array<i32>} : memref<1x8x256xf32, #tpu.memory_space<vmem>>, vector<1x8x256xf32>,
    return
  }
  func.func @transform_0(%arg0: i32, %arg1: i32) -> (i32, i32) {
    %c0_i32 = arith.constant 0 : i32
    %c0_i32_0 = arith.constant 0 : i32
    %c0_i32_1 = arith.constant 0 : i32
    return %c0_i32, %c0_i32_0 : i32, i32
  }
  func.func @transform_1(%arg0: i32, %arg1: i32) -> (i32, i32, i32) {
    %c0_i32 = arith.constant 0 : i32
    %c0_i32_0 = arith.constant 0 : i32
    return %arg0, %c0_i32, %arg1 : i32, i32, i32
  }
  func.func @transform_2(%arg0: i32, %arg1: i32) -> (i32, i32) {
    %c0_i32 = arith.constant 0 : i32
    %c0_i32_0 = arith.constant 0 : i32
    %c0_i32_1 = arith.constant 0 : i32
    return %c0_i32, %c0_i32_0 : i32, i32
  }
  func.func @transform_3(%arg0: i32, %arg1: i32) -> (i32, i32, i32) {
    %c0_i32 = arith.constant 0 : i32
    %c0_i32_0 = arith.constant 0 : i32
    return %arg0, %c0_i32, %arg1 : i32, i32, i32
  }
}

module attributes {stable_mosaic.version = 11 : i64} {
  func.func @_conv2d_kernel(%arg0: i32, %arg1: i32, %arg2: memref<1x8xbf16, #tpu.memory_space<vmem>>, %arg3: memref<1x8x256xbf16, #tpu.memory_space<vmem>>, %arg4: memref<1x1xf32, #tpu.memory_space<vmem>>, %arg5: memref<1x1x256xf32, #tpu.memory_space<vmem>>) attributes {dimension_semantics = [#tpu.dimension_semantics<parallel>, #tpu.dimension_semantics<parallel>], iteration_bounds = array<i64: 4, 1>, scalar_prefetch = 0 : i64, scratch_operands = 0 : i64, tpu.core_type = #tpu.core_type<tc>, window_params = [{pipeline_mode = #tpu.pipeline_mode<synchronous>, transform_indices = @transform_0, window_bounds = array<i64: 1, 8>}, {transform_indices = @transform_1, window_bounds = array<i64: 1, 8, 256>}, {pipeline_mode = #tpu.pipeline_mode<synchronous>, transform_indices = @transform_2, window_bounds = array<i64: 1, 1>}, {transform_indices = @transform_3, window_bounds = array<i64: 1, 1, 256>}]} {
    %c0 = arith.constant 0 : index
    %c0_0 = arith.constant 0 : index
    %0 = vector.load %arg2[%c0, %c0_0] : memref<1x8xbf16, #tpu.memory_space<vmem>>, vector<1x8xbf16>
    %c0_1 = arith.constant 0 : index
    %c0_2 = arith.constant 0 : index
    %c0_3 = arith.constant 0 : index
    %1 = vector.load %arg3[%c0_1, %c0_2, %c0_3] : memref<1x8x256xbf16, #tpu.memory_space<vmem>>, vector<1x8x256xbf16>
    %2 = vector.shape_cast %1 : vector<1x8x256xbf16> to vector<8x256xbf16>
    %cst = arith.constant dense<0.000000e+00> : vector<1x256xf32>
    %3 = tpu.matmul %0, %2, %cst {dimension_numbers = #tpu.dot_dimension_numbers<[1], [0], [0], [1], [0, 0, 1, 1], [], []>} : vector<1x8xbf16>, vector<8x256xbf16>, vector<1x256xf32> -> vector<1x256xf32>
    %c0_4 = arith.constant 0 : index
    %c0_5 = arith.constant 0 : index
    %4 = vector.load %arg4[%c0_4, %c0_5] : memref<1x1xf32, #tpu.memory_space<vmem>>, vector<1x1xf32>
    %5 = vector.broadcast %4 : vector<1x1xf32> to vector<1x256xf32>
    %6 = arith.addf %3, %5 : vector<1x256xf32>
    %c0_6 = arith.constant 0 : index
    %c0_7 = arith.constant 0 : index
    %c0_8 = arith.constant 0 : index
    %7 = vector.load %arg5[%c0_6, %c0_7, %c0_8] : memref<1x1x256xf32, #tpu.memory_space<vmem>>, vector<1x1x256xf32>
    %8 = vector.shape_cast %7 : vector<1x1x256xf32> to vector<1x256xf32>
    %9 = vector.shape_cast %6 : vector<1x256xf32> to vector<1x1x256xf32>
    tpu.vector_store %arg5[%c0_6, %c0_7, %c0_8], %9 {strides = array<i32>} : memref<1x1x256xf32, #tpu.memory_space<vmem>>, vector<1x1x256xf32>,
    return
  }
  func.func @transform_0(%arg0: i32, %arg1: i32) -> (i32, i32) {
    %c0_i32 = arith.constant 0 : i32
    %c0_i32_0 = arith.constant 0 : i32
    %c0_i32_1 = arith.constant 0 : i32
    return %c0_i32, %c0_i32_0 : i32, i32
  }
  func.func @transform_1(%arg0: i32, %arg1: i32) -> (i32, i32, i32) {
    %c0_i32 = arith.constant 0 : i32
    %c0_i32_0 = arith.constant 0 : i32
    return %arg0, %c0_i32, %arg1 : i32, i32, i32
  }
  func.func @transform_2(%arg0: i32, %arg1: i32) -> (i32, i32) {
    %c0_i32 = arith.constant 0 : i32
    %c0_i32_0 = arith.constant 0 : i32
    %c0_i32_1 = arith.constant 0 : i32
    return %c0_i32, %c0_i32_0 : i32, i32
  }
  func.func @transform_3(%arg0: i32, %arg1: i32) -> (i32, i32, i32) {
    %c0_i32 = arith.constant 0 : i32
    %c0_i32_0 = arith.constant 0 : i32
    return %arg0, %c0_i32, %arg1 : i32, i32, i32
  }
}

module attributes {stable_mosaic.version = 11 : i64} {
  func.func @_conv3d_tap_kernel(%arg0: i32, %arg1: i32, %arg2: i32, %arg3: i32, %arg4: memref<1x8x81xbf16, #tpu.memory_space<vmem>>, %arg5: memref<1x1x81x256xbf16, #tpu.memory_space<vmem>>, %arg6: memref<8x1xf32, #tpu.memory_space<vmem>>, %arg7: memref<1x1x8x256xf32, #tpu.memory_space<vmem>>, %arg8: memref<8x256xf32, #tpu.memory_space<vmem>>) attributes {dimension_semantics = [#tpu.dimension_semantics<parallel>, #tpu.dimension_semantics<parallel>, #tpu.dimension_semantics<parallel>, #tpu.dimension_semantics<arbitrary>], iteration_bounds = array<i64: 1, 8, 1, 9>, scalar_prefetch = 0 : i64, scratch_operands = 1 : i64, tpu.core_type = #tpu.core_type<tc>, window_params = [{transform_indices = @transform_0, window_bounds = array<i64: 1, 8, 81>}, {transform_indices = @transform_1, window_bounds = array<i64: 1, 1, 81, 256>}, {pipeline_mode = #tpu.pipeline_mode<synchronous>, transform_indices = @transform_2, window_bounds = array<i64: 8, 1>}, {transform_indices = @transform_3, window_bounds = array<i64: 1, 1, 8, 256>}]} {
    %c0_i32 = arith.constant 0 : i32
    %0 = arith.cmpi eq, %arg3, %c0_i32 : i32
    %1 = arith.extui %0 : i1 to i32
    %c0_i32_0 = arith.constant 0 : i32
    %2 = arith.cmpi ne, %1, %c0_i32_0 : i32
    scf.if %2 {
      %cst_12 = arith.constant 0.000000e+00 : f32
      %14 = vector.broadcast %cst_12 : f32 to vector<8x256xf32>
      %c0_13 = arith.constant 0 : index
      %c0_14 = arith.constant 0 : index
      %15 = vector.load %arg8[%c0_13, %c0_14] : memref<8x256xf32, #tpu.memory_space<vmem>>, vector<8x256xf32>
      tpu.vector_store %arg8[%c0_13, %c0_14], %14 {strides = array<i32>} : memref<8x256xf32, #tpu.memory_space<vmem>>, vector<8x256xf32>,
    } else {
    }
    %c0 = arith.constant 0 : index
    %c0_1 = arith.constant 0 : index
    %3 = vector.load %arg8[%c0, %c0_1] : memref<8x256xf32, #tpu.memory_space<vmem>>, vector<8x256xf32>
    %c0_2 = arith.constant 0 : index
    %c0_3 = arith.constant 0 : index
    %c0_4 = arith.constant 0 : index
    %4 = vector.load %arg4[%c0_2, %c0_3, %c0_4] : memref<1x8x81xbf16, #tpu.memory_space<vmem>>, vector<1x8x81xbf16>
    %5 = vector.shape_cast %4 : vector<1x8x81xbf16> to vector<8x81xbf16>
    %c0_5 = arith.constant 0 : index
    %c0_6 = arith.constant 0 : index
    %c0_7 = arith.constant 0 : index
    %c0_8 = arith.constant 0 : index
    %6 = vector.load %arg5[%c0_5, %c0_6, %c0_7, %c0_8] : memref<1x1x81x256xbf16, #tpu.memory_space<vmem>>, vector<1x1x81x256xbf16>
    %7 = vector.shape_cast %6 : vector<1x1x81x256xbf16> to vector<81x256xbf16>
    %cst = arith.constant dense<0.000000e+00> : vector<8x256xf32>
    %8 = tpu.matmul %5, %7, %cst {dimension_numbers = #tpu.dot_dimension_numbers<[1], [0], [0], [1], [0, 0, 1, 1], [], []>} : vector<8x81xbf16>, vector<81x256xbf16>, vector<8x256xf32> -> vector<8x256xf32>
    %9 = arith.addf %3, %8 : vector<8x256xf32>
    %c0_9 = arith.constant 0 : index
    %c0_10 = arith.constant 0 : index
    %10 = vector.load %arg8[%c0_9, %c0_10] : memref<8x256xf32, #tpu.memory_space<vmem>>, vector<8x256xf32>
    tpu.vector_store %arg8[%c0_9, %c0_10], %9 {strides = array<i32>} : memref<8x256xf32, #tpu.memory_space<vmem>>, vector<8x256xf32>,
    %c8_i32 = arith.constant 8 : i32
    %11 = arith.cmpi eq, %arg3, %c8_i32 : i32
    %12 = arith.extui %11 : i1 to i32
    %c0_i32_11 = arith.constant 0 : i32
    %13 = arith.cmpi ne, %12, %c0_i32_11 : i32
    scf.if %13 {
      %c0_12 = arith.constant 0 : index
      %c0_13 = arith.constant 0 : index
      %14 = vector.load %arg8[%c0_12, %c0_13] : memref<8x256xf32, #tpu.memory_space<vmem>>, vector<8x256xf32>
      %c0_14 = arith.constant 0 : index
      %c0_15 = arith.constant 0 : index
      %15 = vector.load %arg6[%c0_14, %c0_15] : memref<8x1xf32, #tpu.memory_space<vmem>>, vector<8x1xf32>
      %16 = vector.broadcast %15 : vector<8x1xf32> to vector<8x256xf32>
      %17 = arith.addf %14, %16 : vector<8x256xf32>
      %cst_16 = arith.constant 0.000000e+00 : f32
      %18 = vector.broadcast %cst_16 : f32 to vector<8x256xf32>
      %19 = arith.maximumf %17, %18 : vector<8x256xf32>
      %c0_17 = arith.constant 0 : index
      %c0_18 = arith.constant 0 : index
      %c0_19 = arith.constant 0 : index
      %c0_20 = arith.constant 0 : index
      %20 = vector.load %arg7[%c0_17, %c0_18, %c0_19, %c0_20] : memref<1x1x8x256xf32, #tpu.memory_space<vmem>>, vector<1x1x8x256xf32>
      %21 = vector.shape_cast %20 : vector<1x1x8x256xf32> to vector<8x256xf32>
      %22 = vector.shape_cast %19 : vector<8x256xf32> to vector<1x1x8x256xf32>
      tpu.vector_store %arg7[%c0_17, %c0_18, %c0_19, %c0_20], %22 {strides = array<i32>} : memref<1x1x8x256xf32, #tpu.memory_space<vmem>>, vector<1x1x8x256xf32>,
    } else {
    }
    return
  }
  func.func @transform_0(%arg0: i32, %arg1: i32, %arg2: i32, %arg3: i32) -> (i32, i32, i32) {
    %c0_i32 = arith.constant 0 : i32
    %c0_i32_0 = arith.constant 0 : i32
    %c0_i32_1 = arith.constant 0 : i32
    return %arg3, %c0_i32, %c0_i32_0 : i32, i32, i32
  }
  func.func @transform_1(%arg0: i32, %arg1: i32, %arg2: i32, %arg3: i32) -> (i32, i32, i32, i32) {
    %0 = arith.addi %arg1, %arg3 : i32
    %c0_i32 = arith.constant 0 : i32
    %c0_i32_0 = arith.constant 0 : i32
    return %arg0, %0, %c0_i32, %arg2 : i32, i32, i32, i32
  }
  func.func @transform_2(%arg0: i32, %arg1: i32, %arg2: i32, %arg3: i32) -> (i32, i32) {
    %c0_i32 = arith.constant 0 : i32
    %c0_i32_0 = arith.constant 0 : i32
    %c0_i32_1 = arith.constant 0 : i32
    return %c0_i32, %c0_i32_0 : i32, i32
  }
  func.func @transform_3(%arg0: i32, %arg1: i32, %arg2: i32, %arg3: i32) -> (i32, i32, i32, i32) {
    %c0_i32 = arith.constant 0 : i32
    %c0_i32_0 = arith.constant 0 : i32
    return %arg0, %arg1, %c0_i32, %arg2 : i32, i32, i32, i32
  }
}

module attributes {stable_mosaic.version = 11 : i64} {
  func.func @_conv3d_tap_kernel(%arg0: i32, %arg1: i32, %arg2: i32, %arg3: i32, %arg4: memref<1x4x8xbf16, #tpu.memory_space<vmem>>, %arg5: memref<1x1x8x256xbf16, #tpu.memory_space<vmem>>, %arg6: memref<4x1xf32, #tpu.memory_space<vmem>>, %arg7: memref<1x1x4x256xf32, #tpu.memory_space<vmem>>, %arg8: memref<4x256xf32, #tpu.memory_space<vmem>>) attributes {dimension_semantics = [#tpu.dimension_semantics<parallel>, #tpu.dimension_semantics<parallel>, #tpu.dimension_semantics<parallel>, #tpu.dimension_semantics<arbitrary>], iteration_bounds = array<i64: 1, 8, 1, 1>, scalar_prefetch = 0 : i64, scratch_operands = 1 : i64, tpu.core_type = #tpu.core_type<tc>, window_params = [{transform_indices = @transform_0, window_bounds = array<i64: 1, 4, 8>}, {transform_indices = @transform_1, window_bounds = array<i64: 1, 1, 8, 256>}, {pipeline_mode = #tpu.pipeline_mode<synchronous>, transform_indices = @transform_2, window_bounds = array<i64: 4, 1>}, {transform_indices = @transform_3, window_bounds = array<i64: 1, 1, 4, 256>}]} {
    %c0_i32 = arith.constant 0 : i32
    %0 = arith.cmpi eq, %arg3, %c0_i32 : i32
    %1 = arith.extui %0 : i1 to i32
    %c0_i32_0 = arith.constant 0 : i32
    %2 = arith.cmpi ne, %1, %c0_i32_0 : i32
    scf.if %2 {
      %cst_13 = arith.constant 0.000000e+00 : f32
      %14 = vector.broadcast %cst_13 : f32 to vector<4x256xf32>
      %c0_14 = arith.constant 0 : index
      %c0_15 = arith.constant 0 : index
      %15 = vector.load %arg8[%c0_14, %c0_15] : memref<4x256xf32, #tpu.memory_space<vmem>>, vector<4x256xf32>
      tpu.vector_store %arg8[%c0_14, %c0_15], %14 {strides = array<i32>} : memref<4x256xf32, #tpu.memory_space<vmem>>, vector<4x256xf32>,
    } else {
    }
    %c0 = arith.constant 0 : index
    %c0_1 = arith.constant 0 : index
    %3 = vector.load %arg8[%c0, %c0_1] : memref<4x256xf32, #tpu.memory_space<vmem>>, vector<4x256xf32>
    %c0_2 = arith.constant 0 : index
    %c0_3 = arith.constant 0 : index
    %c0_4 = arith.constant 0 : index
    %4 = vector.load %arg4[%c0_2, %c0_3, %c0_4] : memref<1x4x8xbf16, #tpu.memory_space<vmem>>, vector<1x4x8xbf16>
    %5 = vector.shape_cast %4 : vector<1x4x8xbf16> to vector<4x8xbf16>
    %c0_5 = arith.constant 0 : index
    %c0_6 = arith.constant 0 : index
    %c0_7 = arith.constant 0 : index
    %c0_8 = arith.constant 0 : index
    %6 = vector.load %arg5[%c0_5, %c0_6, %c0_7, %c0_8] : memref<1x1x8x256xbf16, #tpu.memory_space<vmem>>, vector<1x1x8x256xbf16>
    %7 = vector.shape_cast %6 : vector<1x1x8x256xbf16> to vector<8x256xbf16>
    %cst = arith.constant dense<0.000000e+00> : vector<4x256xf32>
    %8 = tpu.matmul %5, %7, %cst {dimension_numbers = #tpu.dot_dimension_numbers<[1], [0], [0], [1], [0, 0, 1, 1], [], []>} : vector<4x8xbf16>, vector<8x256xbf16>, vector<4x256xf32> -> vector<4x256xf32>
    %9 = arith.addf %3, %8 : vector<4x256xf32>
    %c0_9 = arith.constant 0 : index
    %c0_10 = arith.constant 0 : index
    %10 = vector.load %arg8[%c0_9, %c0_10] : memref<4x256xf32, #tpu.memory_space<vmem>>, vector<4x256xf32>
    tpu.vector_store %arg8[%c0_9, %c0_10], %9 {strides = array<i32>} : memref<4x256xf32, #tpu.memory_space<vmem>>, vector<4x256xf32>,
    %c0_i32_11 = arith.constant 0 : i32
    %11 = arith.cmpi eq, %arg3, %c0_i32_11 : i32
    %12 = arith.extui %11 : i1 to i32
    %c0_i32_12 = arith.constant 0 : i32
    %13 = arith.cmpi ne, %12, %c0_i32_12 : i32
    scf.if %13 {
      %c0_13 = arith.constant 0 : index
      %c0_14 = arith.constant 0 : index
      %14 = vector.load %arg8[%c0_13, %c0_14] : memref<4x256xf32, #tpu.memory_space<vmem>>, vector<4x256xf32>
      %c0_15 = arith.constant 0 : index
      %c0_16 = arith.constant 0 : index
      %15 = vector.load %arg6[%c0_15, %c0_16] : memref<4x1xf32, #tpu.memory_space<vmem>>, vector<4x1xf32>
      %16 = vector.broadcast %15 : vector<4x1xf32> to vector<4x256xf32>
      %17 = arith.addf %14, %16 : vector<4x256xf32>
      %cst_17 = arith.constant 0.000000e+00 : f32
      %18 = vector.broadcast %cst_17 : f32 to vector<4x256xf32>
      %19 = arith.maximumf %17, %18 : vector<4x256xf32>
      %c0_18 = arith.constant 0 : index
      %c0_19 = arith.constant 0 : index
      %c0_20 = arith.constant 0 : index
      %c0_21 = arith.constant 0 : index
      %20 = vector.load %arg7[%c0_18, %c0_19, %c0_20, %c0_21] : memref<1x1x4x256xf32, #tpu.memory_space<vmem>>, vector<1x1x4x256xf32>
      %21 = vector.shape_cast %20 : vector<1x1x4x256xf32> to vector<4x256xf32>
      %22 = vector.shape_cast %19 : vector<4x256xf32> to vector<1x1x4x256xf32>
      tpu.vector_store %arg7[%c0_18, %c0_19, %c0_20, %c0_21], %22 {strides = array<i32>} : memref<1x1x4x256xf32, #tpu.memory_space<vmem>>, vector<1x1x4x256xf32>,
    } else {
    }
    return
  }
  func.func @transform_0(%arg0: i32, %arg1: i32, %arg2: i32, %arg3: i32) -> (i32, i32, i32) {
    %c0_i32 = arith.constant 0 : i32
    %c0_i32_0 = arith.constant 0 : i32
    %c0_i32_1 = arith.constant 0 : i32
    return %arg3, %c0_i32, %c0_i32_0 : i32, i32, i32
  }
  func.func @transform_1(%arg0: i32, %arg1: i32, %arg2: i32, %arg3: i32) -> (i32, i32, i32, i32) {
    %0 = arith.addi %arg1, %arg3 : i32
    %c0_i32 = arith.constant 0 : i32
    %c0_i32_0 = arith.constant 0 : i32
    return %arg0, %0, %c0_i32, %arg2 : i32, i32, i32, i32
  }
  func.func @transform_2(%arg0: i32, %arg1: i32, %arg2: i32, %arg3: i32) -> (i32, i32) {
    %c0_i32 = arith.constant 0 : i32
    %c0_i32_0 = arith.constant 0 : i32
    %c0_i32_1 = arith.constant 0 : i32
    return %c0_i32, %c0_i32_0 : i32, i32
  }
  func.func @transform_3(%arg0: i32, %arg1: i32, %arg2: i32, %arg3: i32) -> (i32, i32, i32, i32) {
    %c0_i32 = arith.constant 0 : i32
    %c0_i32_0 = arith.constant 0 : i32
    return %arg0, %arg1, %c0_i32, %arg2 : i32, i32, i32, i32
  }
}

module attributes {stable_mosaic.version = 11 : i64} {
  func.func @_conv3d_tap_kernel(%arg0: i32, %arg1: i32, %arg2: i32, %arg3: i32, %arg4: memref<1x1x100xbf16, #tpu.memory_space<vmem>>, %arg5: memref<1x1x100x256xbf16, #tpu.memory_space<vmem>>, %arg6: memref<1x1xf32, #tpu.memory_space<vmem>>, %arg7: memref<1x1x1x256xf32, #tpu.memory_space<vmem>>, %arg8: memref<1x256xf32, #tpu.memory_space<vmem>>) attributes {dimension_semantics = [#tpu.dimension_semantics<parallel>, #tpu.dimension_semantics<parallel>, #tpu.dimension_semantics<parallel>, #tpu.dimension_semantics<arbitrary>], iteration_bounds = array<i64: 1, 8, 1, 5>, scalar_prefetch = 0 : i64, scratch_operands = 1 : i64, tpu.core_type = #tpu.core_type<tc>, window_params = [{transform_indices = @transform_0, window_bounds = array<i64: 1, 1, 100>}, {transform_indices = @transform_1, window_bounds = array<i64: 1, 1, 100, 256>}, {pipeline_mode = #tpu.pipeline_mode<synchronous>, transform_indices = @transform_2, window_bounds = array<i64: 1, 1>}, {transform_indices = @transform_3, window_bounds = array<i64: 1, 1, 1, 256>}]} {
    %c0_i32 = arith.constant 0 : i32
    %0 = arith.cmpi eq, %arg3, %c0_i32 : i32
    %1 = arith.extui %0 : i1 to i32
    %c0_i32_0 = arith.constant 0 : i32
    %2 = arith.cmpi ne, %1, %c0_i32_0 : i32
    scf.if %2 {
      %cst_12 = arith.constant 0.000000e+00 : f32
      %14 = vector.broadcast %cst_12 : f32 to vector<1x256xf32>
      %c0_13 = arith.constant 0 : index
      %c0_14 = arith.constant 0 : index
      %15 = vector.load %arg8[%c0_13, %c0_14] : memref<1x256xf32, #tpu.memory_space<vmem>>, vector<1x256xf32>
      tpu.vector_store %arg8[%c0_13, %c0_14], %14 {strides = array<i32>} : memref<1x256xf32, #tpu.memory_space<vmem>>, vector<1x256xf32>,
    } else {
    }
    %c0 = arith.constant 0 : index
    %c0_1 = arith.constant 0 : index
    %3 = vector.load %arg8[%c0, %c0_1] : memref<1x256xf32, #tpu.memory_space<vmem>>, vector<1x256xf32>
    %c0_2 = arith.constant 0 : index
    %c0_3 = arith.constant 0 : index
    %c0_4 = arith.constant 0 : index
    %4 = vector.load %arg4[%c0_2, %c0_3, %c0_4] : memref<1x1x100xbf16, #tpu.memory_space<vmem>>, vector<1x1x100xbf16>
    %5 = vector.shape_cast %4 : vector<1x1x100xbf16> to vector<1x100xbf16>
    %c0_5 = arith.constant 0 : index
    %c0_6 = arith.constant 0 : index
    %c0_7 = arith.constant 0 : index
    %c0_8 = arith.constant 0 : index
    %6 = vector.load %arg5[%c0_5, %c0_6, %c0_7, %c0_8] : memref<1x1x100x256xbf16, #tpu.memory_space<vmem>>, vector<1x1x100x256xbf16>
    %7 = vector.shape_cast %6 : vector<1x1x100x256xbf16> to vector<100x256xbf16>
    %cst = arith.constant dense<0.000000e+00> : vector<1x256xf32>
    %8 = tpu.matmul %5, %7, %cst {dimension_numbers = #tpu.dot_dimension_numbers<[1], [0], [0], [1], [0, 0, 1, 1], [], []>} : vector<1x100xbf16>, vector<100x256xbf16>, vector<1x256xf32> -> vector<1x256xf32>
    %9 = arith.addf %3, %8 : vector<1x256xf32>
    %c0_9 = arith.constant 0 : index
    %c0_10 = arith.constant 0 : index
    %10 = vector.load %arg8[%c0_9, %c0_10] : memref<1x256xf32, #tpu.memory_space<vmem>>, vector<1x256xf32>
    tpu.vector_store %arg8[%c0_9, %c0_10], %9 {strides = array<i32>} : memref<1x256xf32, #tpu.memory_space<vmem>>, vector<1x256xf32>,
    %c4_i32 = arith.constant 4 : i32
    %11 = arith.cmpi eq, %arg3, %c4_i32 : i32
    %12 = arith.extui %11 : i1 to i32
    %c0_i32_11 = arith.constant 0 : i32
    %13 = arith.cmpi ne, %12, %c0_i32_11 : i32
    scf.if %13 {
      %c0_12 = arith.constant 0 : index
      %c0_13 = arith.constant 0 : index
      %14 = vector.load %arg8[%c0_12, %c0_13] : memref<1x256xf32, #tpu.memory_space<vmem>>, vector<1x256xf32>
      %c0_14 = arith.constant 0 : index
      %c0_15 = arith.constant 0 : index
      %15 = vector.load %arg6[%c0_14, %c0_15] : memref<1x1xf32, #tpu.memory_space<vmem>>, vector<1x1xf32>
      %16 = vector.broadcast %15 : vector<1x1xf32> to vector<1x256xf32>
      %17 = arith.addf %14, %16 : vector<1x256xf32>
      %c0_16 = arith.constant 0 : index
      %c0_17 = arith.constant 0 : index
      %c0_18 = arith.constant 0 : index
      %c0_19 = arith.constant 0 : index
      %18 = vector.load %arg7[%c0_16, %c0_17, %c0_18, %c0_19] : memref<1x1x1x256xf32, #tpu.memory_space<vmem>>, vector<1x1x1x256xf32>
      %19 = vector.shape_cast %18 : vector<1x1x1x256xf32> to vector<1x256xf32>
      %20 = vector.shape_cast %17 : vector<1x256xf32> to vector<1x1x1x256xf32>
      tpu.vector_store %arg7[%c0_16, %c0_17, %c0_18, %c0_19], %20 {strides = array<i32>} : memref<1x1x1x256xf32, #tpu.memory_space<vmem>>, vector<1x1x1x256xf32>,
    } else {
    }
    return
  }
  func.func @transform_0(%arg0: i32, %arg1: i32, %arg2: i32, %arg3: i32) -> (i32, i32, i32) {
    %c0_i32 = arith.constant 0 : i32
    %c0_i32_0 = arith.constant 0 : i32
    %c0_i32_1 = arith.constant 0 : i32
    return %arg3, %c0_i32, %c0_i32_0 : i32, i32, i32
  }
  func.func @transform_1(%arg0: i32, %arg1: i32, %arg2: i32, %arg3: i32) -> (i32, i32, i32, i32) {
    %0 = arith.addi %arg1, %arg3 : i32
    %c0_i32 = arith.constant 0 : i32
    %c0_i32_0 = arith.constant 0 : i32
    return %arg0, %0, %c0_i32, %arg2 : i32, i32, i32, i32
  }
  func.func @transform_2(%arg0: i32, %arg1: i32, %arg2: i32, %arg3: i32) -> (i32, i32) {
    %c0_i32 = arith.constant 0 : i32
    %c0_i32_0 = arith.constant 0 : i32
    %c0_i32_1 = arith.constant 0 : i32
    return %c0_i32, %c0_i32_0 : i32, i32
  }
  func.func @transform_3(%arg0: i32, %arg1: i32, %arg2: i32, %arg3: i32) -> (i32, i32, i32, i32) {
    %c0_i32 = arith.constant 0 : i32
    %c0_i32_0 = arith.constant 0 : i32
    return %arg0, %arg1, %c0_i32, %arg2 : i32, i32, i32, i32
  }
}

</mosaic_0001>

<bundles_post_ra>
// kernel: thisnewnet_forward.16
= control target key start
LH: loop header
LB: loop body
LE: loop exit
PB: predicated region body
PF: predicated region fallthrough
CT: control target
= control target key end

     0   :  { %s466_s12 = smov 0   ;;  %s468_s13 = smov 0   ;;  %s505_s0 = inlined_call_operand.vmem [shape: bf16[8,9], index: 0, kind: input, shape index: {}]   ;;  %s506_s1 = inlined_call_operand.vmem [shape: bf16[4,9,256], index: 1, kind: input, shape index: {}]   ;;  %s507_s2 = inlined_call_operand.vmem [shape: f32[8,1], index: 2, kind: input, shape index: {}]   ;;  %s508_s3 = inlined_call_operand.vmem [shape: f32[4,8,256], index: 3, kind: output, shape index: {}]  }
   0x1   :  { %s470_s14 = smov 0  }
   0x2 LB: > { %s25_s15 = sadd.s32 1, %s438_s13  ;;  %p378_p0 = scmp.ge.s32.totalorder %s442_s14, 1  ;;  %s442_s14 = sphi %s470_s14, %s13_s14   ;;  %s438_s13 = sphi %s468_s13, %s510_s13   ;;  %s434_s12 = sphi %s466_s12, %s509_s12  }
   0x3   : > { %p27_p1 = scmp.ge.s32.totalorder %s25_s15, 4  ;;  %p158_p2 = scmp.lt.s32.totalorder %s442_s14, 5 }
   0x5   : > { %s512_s15 = smov (%p27_p1, %s25_s15), 0  ;;  %p159_p3 = pnand %p378_p0, %p158_p2 }
   0x6   : > { %p191_p4 = scmp.lt.s32.totalorder (!%p159_p3), %s434_s12, 3 }
   0x7   : > { %162 = sbr.rel (%p159_p3) target bundleno = 222 (0xde), region = 32 }
   0xc   : > { %vm232_vm0 = vcmask 1043456   ;;  %v214_v0 = vld [vmem:[%s507_s2] sm:$0xff]  ;;  %v444_v1 = vmov 0   ;;  %s514_s12 = smov (!%p191_p4, %s434_s12), 3  ;;  %vm233_vm1 = vcmask 1044480   ;;  %v445_v2 = vmov 65535  }
   0xd   : > { %274 = vmatprep.mubr.bf16.mxu0 %v444_v1  ;;  %416 = vset.pattern.permute.xlu0 %v444_v1  ;;  %v234_v3 = vsel %vm232_vm0, 4294967295, %v445_v2  ;;  %s388_s18 = sshll.u32 %s514_s12, 4  ;;  %v211_v9 = vld [vmem:[%s505_s0] sm:$0xf]  ;;  %vm228_vm2 = vcmask 72704  }
   0xe   : > { %217 = vperm.xlu0 %416, %v214_v0   ;;  %s198_s21 = scalar_lea.vmem %s506_s1, %s388_s18  ;;  %v235_v4 = vsel %vm233_vm1, %v234_v3, 0  ;;  %s208_s26 = scalar_lea.vmem %s508_s3, %s388_s18 }
   0xf   : > { %v417_v5 = vld [vmem:[%s198_s21 + $0x4] ss:$8 sps:$4 sm:$0x1f]   ;;  %v419_v6 = vld [vmem:[%s198_s21] ss:$8 sps:$4 sm:$0x1f]  }
  0x10   : > { %v240_v7 = vand.u32 %v417_v5, %v235_v4  ;;  %v237_v8 = vand.u32 %v419_v6, %v235_v4 }
  0x12   : > { %256 = vmatprep.subr.bf16.mxu0 %v240_v7 }
  0x13   : > { %257 = vmatpush1.bf16.msra.mxu0 %v237_v8 }
  0x16   : > { %385 = vmatmul.mubr.msk.bf16.vlgmr.msra.gmra.mxu0 %vm228_vm2, %v211_v9 }
  0x89   : > { %v218_v10 = vpop.permute.xlu0 %217 }
  0xd6   : > { %v276_v11 = vpop.f32.mrf.mxu0 }
  0xd7   : > { %v277_v12 = vadd.f32 %v276_v11, %v218_v10 }
  0xd8   : > { %v278_v13 = vpop.f32.mrf.mxu0 }
  0xd9   : > { %v283_v14 = vmax.f32 %v277_v12, 0.0  ;;  %v279_v15 = vadd.f32 %v278_v13, %v218_v10 }
  0xda   : > { %v280_v16 = vpop.f32.mrf.mxu0 }
  0xdb   : > { %285 = vst [vmem:[%s208_s26] sm:$0xff] %v283_v14  ;;  %v284_v17 = vmax.f32 %v279_v15, 0.0 }
  0xdc   : > { %v281_v18 = vpop.f32.mrf.mxu0 }
  0xdd   : > { %286 = vst [vmem:[%s208_s26 + $0x8] sm:$0xff] %v284_v17 }
  0xde PF: > { %s13_s14 = sadd.s32 1, %s442_s14   ;;  %s509_s12 = smov %s438_s13 }
  0xdf   : > { %p10_p5 = scmp.ge.s32.totalorder %s13_s14, 6   ;;  %s510_s13 = smov %s512_s15 }
  0xe1   :  { %12 = sbr.rel (!%p10_p5) target bundleno = 2 (0x2), region = 62 }

// kernel: thisnewnet_forward.17
= control target key start
LH: loop header
LB: loop body
LE: loop exit
PB: predicated region body
PF: predicated region fallthrough
CT: control target
= control target key end

     0   :  { %s524_s12 = smov 0   ;;  %s526_s13 = smov 0   ;;  %s567_s0 = inlined_call_operand.vmem [shape: bf16[8,72], index: 0, kind: input, shape index: {}]   ;;  %s568_s1 = inlined_call_operand.vmem [shape: bf16[4,72,256], index: 1, kind: input, shape index: {}]   ;;  %s569_s2 = inlined_call_operand.vmem [shape: f32[8,1], index: 2, kind: input, shape index: {}]   ;;  %s570_s3 = inlined_call_operand.vmem [shape: f32[4,8,256], index: 3, kind: output, shape index: {}]  }
   0x1   :  { %s528_s14 = smov 0  }
   0x2 LB: > { %s25_s15 = sadd.s32 1, %s497_s13  ;;  %p419_p0 = scmp.ge.s32.totalorder %s501_s14, 1  ;;  %s501_s14 = sphi %s528_s14, %s13_s14   ;;  %s497_s13 = sphi %s526_s13, %s572_s13   ;;  %s493_s12 = sphi %s524_s12, %s571_s12  }
   0x3   : > { %p27_p1 = scmp.ge.s32.totalorder %s25_s15, 4  ;;  %p158_p2 = scmp.lt.s32.totalorder %s501_s14, 5 }
   0x5   : > { %s574_s15 = smov (%p27_p1, %s25_s15), 0  ;;  %p159_p3 = pnand %p419_p0, %p158_p2 }
   0x6   : > { %p191_p4 = scmp.lt.s32.totalorder (!%p159_p3), %s493_s12, 3 }
   0x7   : > { %162 = sbr.rel (%p159_p3) target bundleno = 239 (0xef), region = 32 }
   0xc   : > { %v503_v0 = vmov 0   ;;  %v221_v1 = vld [vmem:[%s569_s2] sm:$0xff]  ;;  %s576_s12 = smov (!%p191_p4, %s493_s12), 3  ;;  %vm276_vm0 = vcmask 1043456   ;;  %vm272_vm1 = vcmask 588800  }
   0xd   : > { %315 = vmatprep.mubr.bf16.mxu0 %v503_v0  ;;  %464 = vset.pattern.permute.xlu0 %v503_v0  ;;  %s438_s18 = smul.u32 72, %s576_s12  ;;  %v211_v14 = vld [vmem:[%s567_s0] sm:$0xf]  ;;  %s437_s24 = sshll.u32 %s576_s12, 4 }
   0xe   : > { %224 = vperm.xlu0 %464, %v221_v1   ;;  %s208_s27 = scalar_lea.vmem %s570_s3, %s437_s24 }
   0xf   : > { %s198_s21 = scalar_lea.vmem %s568_s1, %s438_s18 }
  0x10   : > { %v220_v2 = vld [vmem:[%s198_s21 + $0x40] sm:$0xff]  ;;  %v467_v5 = vld [vmem:[%s198_s21 + $0x34] ss:$8 sps:$4 sm:$0xff]   ;;  %v469_v7 = vld [vmem:[%s198_s21 + $0x30] ss:$8 sps:$4 sm:$0xff]  }
  0x11   : > { %v432_v3 = vcombine.high %v220_v2, %v220_v2  ;;  %v431_v4 = vcombine.low %v220_v2, %v220_v2  ;;  %v470_v8 = vld [vmem:[%s198_s21 + $0x24] ss:$8 sps:$4 sm:$0xff]   ;;  %v472_v9 = vld [vmem:[%s198_s21 + $0x20] ss:$8 sps:$4 sm:$0xff]   ;;  %v473_v10 = vld [vmem:[%s198_s21 + $0x14] ss:$8 sps:$4 sm:$0xff]  }
  0x12   : > { %v475_v11 = vld [vmem:[%s198_s21 + $0x10] ss:$8 sps:$4 sm:$0xff]   ;;  %v476_v12 = vld [vmem:[%s198_s21 + $0x4] ss:$8 sps:$4 sm:$0xff]   ;;  %v478_v13 = vld [vmem:[%s198_s21] ss:$8 sps:$4 sm:$0xff]  }
  0x13   : > { %433 = vmatprep.subr.msk.bf16.mxu0 %vm276_vm0, %v432_v3  ;;  %v278_v6 = vsel %vm276_vm0, %v431_v4, 0 }
  0x14   : > { %290 = vmatpush1.bf16.msra.mxu0 %v278_v6 }
  0x15   : > { %291 = vmatprep.subr.bf16.mxu0 %v467_v5 }
  0x18   : > { %292 = vmatpush1.bf16.msra.mxu0 %v469_v7 }
  0x19   : > { %293 = vmatprep.subr.bf16.mxu0 %v470_v8 }
  0x1c   : > { %294 = vmatpush1.bf16.msra.mxu0 %v472_v9 }
  0x1d   : > { %295 = vmatprep.subr.bf16.mxu0 %v473_v10 }
  0x20   : > { %296 = vmatpush1.bf16.msra.mxu0 %v475_v11 }
  0x21   : > { %297 = vmatprep.subr.bf16.mxu0 %v476_v12 }
  0x24   : > { %298 = vmatpush1.bf16.msra.mxu0 %v478_v13 }
  0x27   : > { %434 = vmatmul.mubr.msk.bf16.vlgmr.msra.gmra.mxu0 %vm272_vm1, %v211_v14 }
  0x89   : > { %v225_v15 = vpop.permute.xlu0 %224 }
  0xe7   : > { %v317_v16 = vpop.f32.mrf.mxu0 }
  0xe8   : > { %v318_v17 = vadd.f32 %v317_v16, %v225_v15 }
  0xe9   : > { %v319_v18 = vpop.f32.mrf.mxu0 }
  0xea   : > { %v324_v19 = vmax.f32 %v318_v17, 0.0  ;;  %v320_v20 = vadd.f32 %v319_v18, %v225_v15 }
  0xeb   : > { %v321_v21 = vpop.f32.mrf.mxu0 }
  0xec   : > { %326 = vst [vmem:[%s208_s27] sm:$0xff] %v324_v19  ;;  %v325_v22 = vmax.f32 %v320_v20, 0.0 }
  0xed   : > { %v322_v23 = vpop.f32.mrf.mxu0 }
  0xee   : > { %327 = vst [vmem:[%s208_s27 + $0x8] sm:$0xff] %v325_v22 }
  0xef PF: > { %s13_s14 = sadd.s32 1, %s501_s14   ;;  %s571_s12 = smov %s497_s13 }
  0xf0   : > { %p10_p5 = scmp.ge.s32.totalorder %s13_s14, 6   ;;  %s572_s13 = smov %s574_s15 }
  0xf2   :  { %12 = sbr.rel (!%p10_p5) target bundleno = 2 (0x2), region = 62 }

// kernel: thisnewnet_forward.18
= control target key start
LH: loop header
LB: loop body
LE: loop exit
PB: predicated region body
PF: predicated region fallthrough
CT: control target
= control target key end

     0   :  { %s515_s12 = smov 0   ;;  %s517_s13 = smov 0   ;;  %s561_s0 = inlined_call_operand.vmem [shape: bf16[16,72], index: 0, kind: input, shape index: {}]   ;;  %s562_s1 = inlined_call_operand.vmem [shape: bf16[4,72,64], index: 1, kind: input, shape index: {}]   ;;  %s563_s2 = inlined_call_operand.vmem [shape: f32[16,1], index: 2, kind: input, shape index: {}]   ;;  %s564_s3 = inlined_call_operand.vmem [shape: f32[4,16,64], index: 3, kind: output, shape index: {}]  }
   0x1   :  { %s519_s14 = smov 0  }
   0x2 LB: > { %s25_s15 = sadd.s32 1, %s486_s13  ;;  %p399_p0 = scmp.ge.s32.totalorder %s490_s14, 1  ;;  %s490_s14 = sphi %s519_s14, %s13_s14   ;;  %s486_s13 = sphi %s517_s13, %s566_s13   ;;  %s482_s12 = sphi %s515_s12, %s565_s12  }
   0x3   : > { %p27_p1 = scmp.ge.s32.totalorder %s25_s15, 4  ;;  %p156_p2 = scmp.lt.s32.totalorder %s490_s14, 5 }
   0x5   : > { %s568_s15 = smov (%p27_p1, %s25_s15), 0  ;;  %p157_p3 = pnand %p399_p0, %p156_p2 }
   0x6   : > { %p186_p4 = scmp.lt.s32.totalorder (!%p157_p3), %s482_s12, 3 }
   0x7   : > { %160 = sbr.rel (%p157_p3) target bundleno = 239 (0xef), region = 32 }
   0xc   : > { %v492_v0 = vmov 0.0   ;;  %vm493_vm0 = vmmov 0   ;;  %v214_v1 = vld [vmem:[%s563_s2] sm:$0xff]  ;;  %s570_s12 = smov (!%p186_p4, %s482_s12), 3  ;;  %v494_v2 = vmov 0   ;;  %v215_v3 = vld [vmem:[%s563_s2 + $0x8] sm:$0xff] }
   0xd   : > { %419 = vmatprep.subr.bf16.mxu0 %v492_v0  ;;  %429 = vmatprep.mubr.msk.bf16.mxu0 %vm493_vm0, %v492_v0  ;;  %s433_s18 = smul.u32 36, %s570_s12  ;;  %vm262_vm1 = vcmask 1043456   ;;  %v467_v10 = vld [vmem:[%s561_s0] sm:$0xff]   ;;  %vm258_vm2 = vcmask 588800   ;;  %s412_s26 = sshll.u32 %s570_s12, 4  ;;  %vm309_vm3 = vcmask 523264  }
   0xe   : > { %461 = vset.pattern.permute.xlu0 %v494_v2  ;;  %s201_s29 = scalar_lea.vmem %s564_s3, %s412_s26 }
   0xf   : > { %218 = vperm.xlu0 %461, %v214_v1   ;;  %s193_s23 = scalar_lea.vmem %s562_s1, %s433_s18 }
  0x10   : > { %v462_v4 = vld [vmem:[%s193_s23 + $0x20] ss:$0 sps:$4 sm:$0xff]   ;;  %v463_v6 = vld [vmem:[%s193_s23 + $0x18] sm:$0xff]   ;;  %v464_v7 = vld [vmem:[%s193_s23 + $0x10] sm:$0xff]  }
  0x11   : > { %v264_v5 = vsel %vm262_vm1, %v462_v4, 0  ;;  %v465_v8 = vld [vmem:[%s193_s23 + $0x8] sm:$0xff]   ;;  %v466_v9 = vld [vmem:[%s193_s23] sm:$0xff]  }
  0x12   : > { %420 = vmatpush3.bf16.msra.mxu0 %v264_v5 }
  0x13   : > { %223 = vperm.xlu0 %461, %v215_v3   ;;  %421 = vmatprep.subr.bf16.mxu0 %v492_v0 }
  0x16   : > { %422 = vmatpush3.bf16.msra.mxu0 %v463_v6 }
  0x17   : > { %423 = vmatprep.subr.bf16.mxu0 %v492_v0 }
  0x1a   : > { %424 = vmatpush3.bf16.msra.mxu0 %v464_v7 }
  0x1b   : > { %425 = vmatprep.subr.bf16.mxu0 %v492_v0 }
  0x1e   : > { %426 = vmatpush3.bf16.msra.mxu0 %v465_v8 }
  0x1f   : > { %427 = vmatprep.subr.bf16.mxu0 %v492_v0 }
  0x22   : > { %428 = vmatpush3.bf16.msra.mxu0 %v466_v9 }
  0x25   : > { %430 = vmatmul.mubr.msk.bf16.vlgmr.msra.gmra.mxu0 %vm258_vm2, %v467_v10 }
  0x8a   : > { %v219_v11 = vpop.permute.xlu0 %218 }
  0x8e   : > { %v224_v16 = vpop.permute.xlu0 %223 }
  0xe5   : > { %v300_v12 = vpop.f32.mrf.mxu0 }
  0xe6   : > { %v301_v13 = vadd.f32 %v300_v12, %v219_v11 }
  0xe7   : > { %v431_v14 = vpop.f32.mrf.mxu0 }
  0xe8   : > { %v307_v15 = vmax.f32 %v301_v13, 0.0 }
  0xe9   : > { %v303_v17 = vpop.f32.mrf.mxu0 }
  0xea   : > { %310 = vst.msk [vmem:[%s201_s29] sm:$0xff] %vm309_vm3, %v307_v15  ;;  %v304_v18 = vadd.f32 %v303_v17, %v224_v16 }
  0xeb   : > { %v432_v19 = vpop.f32.mrf.mxu0 }
  0xec   : > { %v308_v20 = vmax.f32 %v304_v18, 0.0 }
  0xee   : > { %311 = vst.msk [vmem:[%s201_s29 + $0x8] sm:$0xff] %vm309_vm3, %v308_v20 }
  0xef PF: > { %s13_s14 = sadd.s32 1, %s490_s14   ;;  %s565_s12 = smov %s486_s13 }
  0xf0   : > { %p10_p5 = scmp.ge.s32.totalorder %s13_s14, 6   ;;  %s566_s13 = smov %s568_s15 }
  0xf2   :  { %12 = sbr.rel (!%p10_p5) target bundleno = 2 (0x2), region = 62 }

// kernel: thisnewnet_forward.19
= control target key start
LH: loop header
LB: loop body
LE: loop exit
PB: predicated region body
PF: predicated region fallthrough
CT: control target
= control target key end

     0   :  { %s538_s12 = smov 0   ;;  %s540_s13 = smov 0   ;;  %s587_s0 = inlined_call_operand.vmem [shape: bf16[16,144], index: 0, kind: input, shape index: {}]   ;;  %s588_s1 = inlined_call_operand.vmem [shape: bf16[4,144,64], index: 1, kind: input, shape index: {}]   ;;  %s589_s2 = inlined_call_operand.vmem [shape: f32[16,1], index: 2, kind: input, shape index: {}]   ;;  %s590_s3 = inlined_call_operand.vmem [shape: f32[4,16,64], index: 3, kind: output, shape index: {}]  }
   0x1   :  { %s542_s14 = smov 0  }
   0x2 LB: > { %s25_s15 = sadd.s32 1, %s511_s13  ;;  %p435_p0 = scmp.ge.s32.totalorder %s515_s14, 1  ;;  %s515_s14 = sphi %s542_s14, %s13_s14   ;;  %s511_s13 = sphi %s540_s13, %s592_s13   ;;  %s507_s12 = sphi %s538_s12, %s591_s12  }
   0x3   : > { %p27_p1 = scmp.ge.s32.totalorder %s25_s15, 4  ;;  %p156_p2 = scmp.lt.s32.totalorder %s515_s14, 5 }
   0x5   : > { %s594_s15 = smov (%p27_p1, %s25_s15), 0  ;;  %p157_p3 = pnand %p435_p0, %p156_p2 }
   0x6   : > { %p186_p4 = scmp.lt.s32.totalorder (!%p157_p3), %s507_s12, 3 }
   0x7   : > { %160 = sbr.rel (%p157_p3) target bundleno = 254 (0xfe), region = 32 }
   0xc   : > { %v517_v0 = vmov 0   ;;  %v492_v1 = vld [vmem:[%s587_s0 + $0x4] ss:$8 sps:$4 sm:$0xff]   ;;  %vm298_vm0 = vcmask 130048   ;;  %s596_s12 = smov (!%p186_p4, %s507_s12), 3  ;;  %vm345_vm1 = vcmask 523264  }
   0xd   : > { %302 = vmatprep.subr.bf16.mxu0 %v517_v0  ;;  %480 = vset.pattern.permute.xlu0 %v517_v0  ;;  %v223_v2 = vld [vmem:[%s589_s2] sm:$0xff]  ;;  %v224_v3 = vld [vmem:[%s589_s2 + $0x8] sm:$0xff]  ;;  %s454_s22 = smul.u32 72, %s596_s12  ;;  %s453_s28 = sshll.u32 %s596_s12, 4 }
   0xe   : > { %227 = vperm.xlu0 %480, %v223_v2   ;;  %450 = vmatprep.mubr.msk.bf16.mxu0 %vm298_vm0, %v492_v1  ;;  %v490_v13 = vld [vmem:[%s587_s0] ss:$8 sps:$4 sm:$0xff]   ;;  %s201_s4 = scalar_lea.vmem %s590_s3, %s453_s28 }
   0xf   : > { %s193_s25 = scalar_lea.vmem %s588_s1, %s454_s22 }
  0x10   : > { %v481_v4 = vld [vmem:[%s193_s25 + $0x38] sm:$0xff]   ;;  %v482_v5 = vld [vmem:[%s193_s25 + $0x30] sm:$0xff]   ;;  %v483_v6 = vld [vmem:[%s193_s25 + $0x28] sm:$0xff]  }
  0x11   : > { %303 = vmatpush1.bf16.msra.mxu0 %v481_v4  ;;  %v484_v7 = vld [vmem:[%s193_s25 + $0x20] sm:$0xff]   ;;  %v485_v8 = vld [vmem:[%s193_s25 + $0x18] sm:$0xff]   ;;  %v486_v9 = vld [vmem:[%s193_s25 + $0x10] sm:$0xff]  }
  0x12   : > { %232 = vperm.xlu0 %480, %v224_v3   ;;  %304 = vmatprep.subr.bf16.mxu0 %v517_v0  ;;  %v487_v10 = vld [vmem:[%s193_s25 + $0x8] sm:$0xff]   ;;  %v488_v11 = vld [vmem:[%s193_s25] sm:$0xff]  }
  0x13   : > { %v489_v12 = vld [vmem:[%s193_s25 + $0x40] sm:$0xff]  }
  0x15   : > { %305 = vmatpush1.bf16.msra.mxu0 %v482_v5 }
  0x16   : > { %306 = vmatprep.subr.bf16.mxu0 %v517_v0 }
  0x19   : > { %307 = vmatpush1.bf16.msra.mxu0 %v483_v6 }
  0x1a   : > { %308 = vmatprep.subr.bf16.mxu0 %v517_v0 }
  0x1d   : > { %309 = vmatpush1.bf16.msra.mxu0 %v484_v7 }
  0x1e   : > { %310 = vmatprep.subr.bf16.mxu0 %v517_v0 }
  0x21   : > { %311 = vmatpush1.bf16.msra.mxu0 %v485_v8 }
  0x22   : > { %312 = vmatprep.subr.bf16.mxu0 %v517_v0 }
  0x25   : > { %313 = vmatpush1.bf16.msra.mxu0 %v486_v9 }
  0x26   : > { %314 = vmatprep.subr.bf16.mxu0 %v517_v0 }
  0x29   : > { %315 = vmatpush1.bf16.msra.mxu0 %v487_v10 }
  0x2a   : > { %316 = vmatprep.subr.bf16.mxu0 %v517_v0 }
  0x2d   : > { %317 = vmatpush1.bf16.msra.mxu0 %v488_v11 }
  0x2e   : > { %332 = vmatprep.subr.bf16.mxu0 %v517_v0 }
  0x31   : > { %333 = vmatpush2.bf16.msra.mxu0 %v489_v12 }
  0x34   : > { %335 = vmatmul.mubr.bf16.vlgmr.msra.gmra.mxu0 %v490_v13 }
  0x89   : > { %v228_v14 = vpop.permute.xlu0 %227 }
  0x8d   : > { %v233_v19 = vpop.permute.xlu0 %232 }
  0xf4   : > { %v336_v15 = vpop.f32.mrf.mxu0 }
  0xf5   : > { %v337_v16 = vadd.f32 %v336_v15, %v228_v14 }
  0xf6   : > { %v338_v17 = vpop.f32.mrf.mxu0 }
  0xf7   : > { %v343_v18 = vmax.f32 %v337_v16, 0.0 }
  0xf8   : > { %v339_v20 = vpop.f32.mrf.mxu0 }
  0xf9   : > { %346 = vst.msk [vmem:[%s201_s4] sm:$0xff] %vm345_vm1, %v343_v18  ;;  %v340_v21 = vadd.f32 %v339_v20, %v233_v19 }
  0xfa   : > { %v341_v22 = vpop.f32.mrf.mxu0 }
  0xfb   : > { %v344_v23 = vmax.f32 %v340_v21, 0.0 }
  0xfd   : > { %347 = vst.msk [vmem:[%s201_s4 + $0x8] sm:$0xff] %vm345_vm1, %v344_v23 }
  0xfe PF: > { %s13_s14 = sadd.s32 1, %s515_s14   ;;  %s591_s12 = smov %s511_s13 }
  0xff   : > { %p10_p5 = scmp.ge.s32.totalorder %s13_s14, 6   ;;  %s592_s13 = smov %s594_s15 }
 0x101   :  { %12 = sbr.rel (!%p10_p5) target bundleno = 2 (0x2), region = 62 }

// kernel: thisnewnet_forward.20
= control target key start
LH: loop header
LB: loop body
LE: loop exit
PB: predicated region body
PF: predicated region fallthrough
CT: control target
= control target key end

     0   :  { %s600_s12 = smov 0   ;;  %s602_s13 = smov 0   ;;  %s678_s0 = inlined_call_operand.vmem [shape: bf16[32,144], index: 0, kind: input, shape index: {}]   ;;  %s679_s1 = inlined_call_operand.vmem [shape: bf16[4,144,16], index: 1, kind: input, shape index: {}]   ;;  %s680_s2 = inlined_call_operand.vmem [shape: f32[32,1], index: 2, kind: input, shape index: {}]   ;;  %s681_s3 = inlined_call_operand.vmem [shape: f32[4,32,16], index: 3, kind: output, shape index: {}]  }
   0x1   :  { %s604_s14 = smov 0  }
   0x2 LB: > { %s25_s15 = sadd.s32 1, %s573_s13  ;;  %p472_p0 = scmp.ge.s32.totalorder %s577_s14, 1  ;;  %s577_s14 = sphi %s604_s14, %s13_s14   ;;  %s573_s13 = sphi %s602_s13, %s683_s13   ;;  %s569_s12 = sphi %s600_s12, %s682_s12  }
   0x3   : > { %p27_p1 = scmp.ge.s32.totalorder %s25_s15, 4  ;;  %p156_p2 = scmp.lt.s32.totalorder %s577_s14, 5 }
   0x5   : > { %s685_s15 = smov (%p27_p1, %s25_s15), 0  ;;  %p157_p3 = pnand %p472_p0, %p156_p2 }
   0x6   : > { %p186_p4 = scmp.lt.s32.totalorder (!%p157_p3), %s569_s12, 3 }
   0x7   : > { %160 = sbr.rel (%p157_p3) target bundleno = 254 (0xfe), region = 32 }
   0xc   : > { %v579_v0 = vmov 0   ;;  %v551_v1 = vld [vmem:[%s678_s0 + $0x4] ss:$8 sps:$4 sm:$0xff]   ;;  %vm321_vm0 = vcmask 130048   ;;  %s687_s12 = smov (!%p186_p4, %s569_s12), 3  ;;  %v227_v3 = vld [vmem:[%s680_s2 + $0x10] sm:$0xff] }
   0xd   : > { %328 = vmatprep.subr.bf16.mxu0 %v579_v0  ;;  %494 = vmatprep.subr.bf16.mxu1 %v579_v0  ;;  %v554_v2 = vld [vmem:[%s678_s0 + $0x14] ss:$8 sps:$4 sm:$0xff]   ;;  %v225_v4 = vld [vmem:[%s680_s2] sm:$0xff]  ;;  %s512_s24 = smul.u32 72, %s687_s12  ;;  %v226_v6 = vld [vmem:[%s680_s2 + $0x8] sm:$0xff]  ;;  %s493_s9 = sshll.u32 %s687_s12, 5 }
   0xe   : > { %539 = vset.pattern.permute.xlu1 %v579_v0  ;;  %538 = vset.pattern.permute.xlu0 %v579_v0  ;;  %v228_v5 = vld [vmem:[%s680_s2 + $0x18] sm:$0xff]  ;;  %v549_v16 = vld [vmem:[%s678_s0] ss:$8 sps:$4 sm:$0xff]   ;;  %s201_s16 = scalar_lea.vmem %s681_s3, %s493_s9 }
   0xf   : > { %489 = vmatprep.mubr.msk.bf16.mxu0 %vm321_vm0, %v551_v1  ;;  %241 = vperm.xlu1 %539, %v227_v3   ;;  %s644_s4 = scalar_lea.vmem %s679_s1, %s512_s24  ;;  %v552_v17 = vld [vmem:[%s678_s0 + $0x10] ss:$8 sps:$4 sm:$0xff]  }
  0x10   : > { %490 = vmatprep.mubr.msk.bf16.mxu1 %vm321_vm0, %v554_v2  ;;  %231 = vperm.xlu0 %538, %v225_v4   ;;  %v540_v7 = vld [vmem:[%s644_s4 + $0x38] sm:$0xff]   ;;  %v541_v8 = vld [vmem:[%s644_s4 + $0x30] sm:$0xff]   ;;  %v542_v9 = vld [vmem:[%s644_s4 + $0x28] sm:$0xff]  }
  0x11   : > { %329 = vmatpush1.bf16.msra.mxu0 %v540_v7  ;;  %503 = vmatpush1.bf16.msra.mxu1 %v540_v7  ;;  %v543_v10 = vld [vmem:[%s644_s4 + $0x20] sm:$0xff]   ;;  %v544_v11 = vld [vmem:[%s644_s4 + $0x18] sm:$0xff]   ;;  %v545_v12 = vld [vmem:[%s644_s4 + $0x10] sm:$0xff]  }
  0x12   : > { %330 = vmatprep.subr.bf16.mxu0 %v579_v0  ;;  %495 = vmatprep.subr.bf16.mxu1 %v579_v0  ;;  %v546_v13 = vld [vmem:[%s644_s4 + $0x8] sm:$0xff]   ;;  %v547_v14 = vld [vmem:[%s644_s4] sm:$0xff]  }
  0x13   : > { %246 = vperm.xlu1 %539, %v228_v5   ;;  %v548_v15 = vld [vmem:[%s644_s4 + $0x40] sm:$0xff]  }
  0x14   : > { %236 = vperm.xlu0 %538, %v226_v6  }
  0x15   : > { %331 = vmatpush1.bf16.msra.mxu0 %v541_v8  ;;  %504 = vmatpush1.bf16.msra.mxu1 %v541_v8 }
  0x16   : > { %332 = vmatprep.subr.bf16.mxu0 %v579_v0  ;;  %496 = vmatprep.subr.bf16.mxu1 %v579_v0 }
  0x19   : > { %333 = vmatpush1.bf16.msra.mxu0 %v542_v9  ;;  %505 = vmatpush1.bf16.msra.mxu1 %v542_v9 }
  0x1a   : > { %334 = vmatprep.subr.bf16.mxu0 %v579_v0  ;;  %497 = vmatprep.subr.bf16.mxu1 %v579_v0 }
  0x1d   : > { %335 = vmatpush1.bf16.msra.mxu0 %v543_v10  ;;  %506 = vmatpush1.bf16.msra.mxu1 %v543_v10 }
  0x1e   : > { %336 = vmatprep.subr.bf16.mxu0 %v579_v0  ;;  %498 = vmatprep.subr.bf16.mxu1 %v579_v0 }
  0x21   : > { %337 = vmatpush1.bf16.msra.mxu0 %v544_v11  ;;  %507 = vmatpush1.bf16.msra.mxu1 %v544_v11 }
  0x22   : > { %338 = vmatprep.subr.bf16.mxu0 %v579_v0  ;;  %499 = vmatprep.subr.bf16.mxu1 %v579_v0 }
  0x25   : > { %339 = vmatpush1.bf16.msra.mxu0 %v545_v12  ;;  %508 = vmatpush1.bf16.msra.mxu1 %v545_v12 }
  0x26   : > { %340 = vmatprep.subr.bf16.mxu0 %v579_v0  ;;  %500 = vmatprep.subr.bf16.mxu1 %v579_v0 }
  0x29   : > { %341 = vmatpush1.bf16.msra.mxu0 %v546_v13  ;;  %509 = vmatpush1.bf16.msra.mxu1 %v546_v13 }
  0x2a   : > { %342 = vmatprep.subr.bf16.mxu0 %v579_v0  ;;  %501 = vmatprep.subr.bf16.mxu1 %v579_v0 }
  0x2d   : > { %343 = vmatpush1.bf16.msra.mxu0 %v547_v14  ;;  %510 = vmatpush1.bf16.msra.mxu1 %v547_v14 }
  0x2e   : > { %358 = vmatprep.subr.bf16.mxu0 %v579_v0  ;;  %502 = vmatprep.subr.bf16.mxu1 %v579_v0 }
  0x31   : > { %359 = vmatpush2.bf16.msra.mxu0 %v548_v15  ;;  %511 = vmatpush2.bf16.msra.mxu1 %v548_v15 }
  0x34   : > { %361 = vmatmul.mubr.bf16.vlgmr.msra.gmra.mxu0 %v549_v16  ;;  %369 = vmatmul.mubr.bf16.vlgmr.msra.gmra.mxu1 %v552_v17 }
  0x8a   : > { %v242_v18 = vpop.permute.xlu1 %241 }
  0x8b   : > { %v232_v19 = vpop.permute.xlu0 %231 }
  0x8e   : > { %v247_v26 = vpop.permute.xlu1 %246 }
  0x8f   : > { %v237_v27 = vpop.permute.xlu0 %236 }
  0xf4   : > { %v362_v20 = vpop.f32.mrf.mxu0  ;;  %v370_v21 = vpop.f32.mrf.mxu1 }
  0xf5   : > { %v363_v22 = vadd.f32 %v362_v20, %v232_v19  ;;  %v371_v23 = vadd.f32 %v370_v21, %v242_v18 }
  0xf6   : > { %v364_v24 = vpop.f32.mrf.mxu0  ;;  %v372_v25 = vpop.f32.mrf.mxu1 }
  0xf7   : > { %v377_v28 = vmax.f32 %v363_v22, 0.0  ;;  %v379_v29 = vmax.f32 %v371_v23, 0.0 }
  0xf8   : > { %v365_v30 = vpop.f32.mrf.mxu0  ;;  %v373_v31 = vpop.f32.mrf.mxu1 }
  0xf9   : > { %381 = vst.msk [vmem:[%s201_s16] sm:$0xff] %vm321_vm0, %v377_v28  ;;  %383 = vst.msk [vmem:[%s201_s16 + $0x10] sm:$0xff] %vm321_vm0, %v379_v29  ;;  %v366_v32 = vadd.f32 %v365_v30, %v237_v27  ;;  %v374_v33 = vadd.f32 %v373_v31, %v247_v26 }
  0xfa   : > { %v367_v34 = vpop.f32.mrf.mxu0  ;;  %v375_v35 = vpop.f32.mrf.mxu1 }
  0xfb   : > { %v378_v36 = vmax.f32 %v366_v32, 0.0  ;;  %v380_v37 = vmax.f32 %v374_v33, 0.0 }
  0xfd   : > { %382 = vst.msk [vmem:[%s201_s16 + $0x8] sm:$0xff] %vm321_vm0, %v378_v36  ;;  %384 = vst.msk [vmem:[%s201_s16 + $0x18] sm:$0xff] %vm321_vm0, %v380_v37 }
  0xfe PF: > { %s13_s14 = sadd.s32 1, %s577_s14   ;;  %s682_s12 = smov %s573_s13 }
  0xff   : > { %p10_p5 = scmp.ge.s32.totalorder %s13_s14, 6   ;;  %s683_s13 = smov %s685_s15 }
 0x101   :  { %12 = sbr.rel (!%p10_p5) target bundleno = 2 (0x2), region = 62 }

// kernel: thisnewnet_forward.21
= control target key start
LH: loop header
LB: loop body
LE: loop exit
PB: predicated region body
PF: predicated region fallthrough
CT: control target
= control target key end

     0   :  { %s782_s12 = smov 0   ;;  %s784_s13 = smov 0   ;;  %s875_s0 = inlined_call_operand.vmem [shape: bf16[32,288], index: 0, kind: input, shape index: {}]   ;;  %s876_s1 = inlined_call_operand.vmem [shape: bf16[4,288,16], index: 1, kind: input, shape index: {}]   ;;  %s877_s2 = inlined_call_operand.vmem [shape: f32[32,1], index: 2, kind: input, shape index: {}]   ;;  %s878_s3 = inlined_call_operand.vmem [shape: f32[4,32,16], index: 3, kind: output, shape index: {}]  }
   0x1   :  { %s786_s14 = smov 0  }
   0x2 LB: > { %s25_s15 = sadd.s32 1, %s755_s13  ;;  %p610_p0 = scmp.ge.s32.totalorder %s759_s14, 1  ;;  %s759_s14 = sphi %s786_s14, %s13_s14   ;;  %s755_s13 = sphi %s784_s13, %s880_s13   ;;  %s751_s12 = sphi %s782_s12, %s879_s12  }
   0x3   : > { %p27_p1 = scmp.ge.s32.totalorder %s25_s15, 4  ;;  %p156_p2 = scmp.lt.s32.totalorder %s759_s14, 5 }
   0x5   : > { %s882_s15 = smov (%p27_p1, %s25_s15), 0  ;;  %p157_p3 = pnand %p610_p0, %p156_p2 }
   0x6   : > { %p186_p4 = scmp.lt.s32.totalorder (!%p157_p3), %s751_s12, 3 }
   0x7   : > { %160 = sbr.rel (%p157_p3) target bundleno = 265 (0x109), region = 32 }
   0xc   : > { %vm409_vm0 = vcmask 261120   ;;  %v730_v0 = vld [vmem:[%s875_s0 + $0x4] ss:$12 sps:$4 sm:$0xff]   ;;  %s884_s12 = smov (!%p186_p4, %s751_s12), 3  ;;  %v732_v1 = vld [vmem:[%s875_s0 + $0x8] ss:$12 sps:$4 sm:$0xff]  }
   0xd   : > { %448 = vmatprep.mubr.bf16.mxu0 %v730_v0  ;;  %s683_s20 = smul.u32 144, %s884_s12  ;;  %679 = vmatprep.mubr.msk.bf16.mxu1 %vm409_vm0, %v732_v1  ;;  %v761_v2 = vmov 0   ;;  %v247_v3 = vld [vmem:[%s877_s2] sm:$0xff]  ;;  %v249_v4 = vld [vmem:[%s877_s2 + $0x10] sm:$0xff]  ;;  %v248_v5 = vld [vmem:[%s877_s2 + $0x8] sm:$0xff]  ;;  %s642_s17 = sshll.u32 %s884_s12, 5 }
   0xe   : > { %709 = vset.pattern.permute.xlu0 %v761_v2  ;;  %710 = vset.pattern.permute.xlu1 %v761_v2  ;;  %v250_v6 = vld [vmem:[%s877_s2 + $0x18] sm:$0xff]  ;;  %v733_v22 = vld [vmem:[%s875_s0 + $0x20] ss:$12 sps:$4 sm:$0xff]   ;;  %vm518_vm1 = vcmask 130048  }
   0xf   : > { %253 = vperm.xlu0 %709, %v247_v3   ;;  %s819_s27 = scalar_lea.vmem %s876_s1, %s683_s20  ;;  %263 = vperm.xlu1 %710, %v249_v4   ;;  %v728_v26 = vld [vmem:[%s875_s0] ss:$12 sps:$4 sm:$0xff]   ;;  %v734_v27 = vld [vmem:[%s875_s0 + $0x1c] ss:$12 sps:$4 sm:$0xff]   ;;  %v736_v28 = vld [vmem:[%s875_s0 + $0x18] ss:$12 sps:$4 sm:$0xff]   ;;  %s201_s20 = scalar_lea.vmem %s878_s3, %s642_s17 }
  0x10   : > { %v711_v7 = vld [vmem:[%s819_s27 + $0x78] sm:$0xff]   ;;  %v713_v9 = vld [vmem:[%s819_s27 + $0x70] sm:$0xff]   ;;  %v715_v11 = vld [vmem:[%s819_s27 + $0x68] sm:$0xff]  }
  0x11   : > { %v712_v8 = vld [vmem:[%s819_s27 + $0x38] sm:$0xff]   ;;  %643 = vmatprep.subr.bf16.mxu0 %v711_v7  ;;  %v714_v10 = vld [vmem:[%s819_s27 + $0x30] sm:$0xff]   ;;  %v716_v12 = vld [vmem:[%s819_s27 + $0x28] sm:$0xff]  }
  0x12   : > { %644 = vmatpush3.bf16.msra.mxu0 %v712_v8  ;;  %v717_v13 = vld [vmem:[%s819_s27 + $0x60] sm:$0xff]   ;;  %v719_v15 = vld [vmem:[%s819_s27 + $0x58] sm:$0xff]   ;;  %v726_v17 = vld [vmem:[%s819_s27 + $0x88] sm:$0xff]  }
  0x13   : > { %258 = vperm.xlu0 %709, %v248_v5   ;;  %268 = vperm.xlu1 %710, %v250_v6   ;;  %v718_v14 = vld [vmem:[%s819_s27 + $0x20] sm:$0xff]   ;;  %v720_v16 = vld [vmem:[%s819_s27 + $0x18] sm:$0xff]   ;;  %v721_v18 = vld [vmem:[%s819_s27 + $0x50] sm:$0xff]  }
  0x14   : > { %645 = vmatprep.subr.bf16.mxu0 %v713_v9  ;;  %675 = vmatprep.subr.bf16.mxu1 %v726_v17  ;;  %v731_v19 = vld [vmem:[%s819_s27 + $0x80] sm:$0xff]   ;;  %v722_v20 = vld [vmem:[%s819_s27 + $0x10] sm:$0xff]   ;;  %v723_v21 = vld [vmem:[%s819_s27 + $0x48] sm:$0xff]  }
  0x15   : > { %676 = vmatpush3.bf16.msra.mxu1 %v726_v17  ;;  %v724_v23 = vld [vmem:[%s819_s27 + $0x8] sm:$0xff]   ;;  %v725_v24 = vld [vmem:[%s819_s27 + $0x40] sm:$0xff]  }
  0x16   : > { %646 = vmatpush3.bf16.msra.mxu0 %v714_v10  ;;  %677 = vmatprep.subr.bf16.mxu1 %v731_v19  ;;  %v727_v25 = vld [vmem:[%s819_s27] sm:$0xff]  }
  0x17   : > { %647 = vmatprep.subr.bf16.mxu0 %v715_v11 }
  0x19   : > { %678 = vmatpush3.bf16.msra.mxu1 %v731_v19 }
  0x1a   : > { %648 = vmatpush3.bf16.msra.mxu0 %v716_v12 }
  0x1b   : > { %649 = vmatprep.subr.bf16.mxu0 %v717_v13 }
  0x1c   : > { %680 = vmatmul.mubr.msk.bf16.vlgmr.msra.gmra.mxu1 %vm409_vm0, %v733_v22 }
  0x1e   : > { %650 = vmatpush3.bf16.msra.mxu0 %v718_v14 }
  0x1f   : > { %651 = vmatprep.subr.bf16.mxu0 %v719_v15 }
  0x22   : > { %652 = vmatpush3.bf16.msra.mxu0 %v720_v16 }
  0x23   : > { %653 = vmatprep.subr.bf16.mxu0 %v721_v18 }
  0x26   : > { %654 = vmatpush3.bf16.msra.mxu0 %v722_v20 }
  0x27   : > { %655 = vmatprep.subr.bf16.mxu0 %v723_v21 }
  0x2a   : > { %656 = vmatpush3.bf16.msra.mxu0 %v724_v23 }
  0x2b   : > { %657 = vmatprep.subr.bf16.mxu0 %v725_v24 }
  0x2e   : > { %658 = vmatpush3.bf16.msra.mxu0 %v727_v25 }
  0x31   : > { %449 = vmatmul.mubr.bf16.vlgmr.msra.gmra.mxu0 %v728_v26 }
  0x32   : > { %456 = vmatprep.mubr.bf16.mxu0 %v734_v27 }
  0x39   : > { %457 = vmatmul.mubr.bf16.gmra.mxu0 %v736_v28 }
  0x8a   : > { %v254_v30 = vpop.permute.xlu0 %253  ;;  %v264_v46 = vpop.permute.xlu1 %263 }
  0x8e   : > { %v259_v39 = vpop.permute.xlu0 %258  ;;  %v269_v56 = vpop.permute.xlu1 %268 }
  0xdc   : > { %v681_v29 = vpop.f32.mrf.mxu1 }
  0xde   : > { %v499_v32 = vpop.f32.mrf.mxu1 }
  0xe0   : > { %v682_v36 = vpop.f32.mrf.mxu1 }
  0xe2   : > { %v502_v43 = vpop.f32.mrf.mxu1 }
  0xf1   : > { %v659_v31 = vpop.f32.mrf.mxu0 }
  0xf3   : > { %v660_v33 = vpop.f32.mrf.mxu0 }
  0xf4   : > { %v661_v34 = vadd.f32 %v660_v33, %v659_v31 }
  0xf5   : > { %v662_v35 = vpop.f32.mrf.mxu0 }
  0xf6   : > { %v451_v37 = vadd.f32 %v661_v34, %v254_v30 }
  0xf7   : > { %v663_v38 = vpop.f32.mrf.mxu0 }
  0xf8   : > { %v664_v40 = vadd.f32 %v663_v38, %v662_v35  ;;  %v500_v41 = vadd.f32 %v499_v32, %v451_v37 }
  0xf9   : > { %v665_v42 = vpop.f32.mrf.mxu0 }
  0xfa   : > { %v514_v44 = vmax.f32 %v500_v41, 0.0  ;;  %v454_v45 = vadd.f32 %v664_v40, %v259_v39 }
  0xfb   : > { %v666_v47 = vpop.f32.mrf.mxu0 }
  0xfc   : > { %519 = vst.msk [vmem:[%s201_s20] sm:$0xff] %vm518_vm1, %v514_v44  ;;  %v667_v48 = vadd.f32 %v666_v47, %v665_v42  ;;  %v503_v49 = vadd.f32 %v502_v43, %v454_v45 }
  0xfd   : > { %v668_v50 = vpop.f32.mrf.mxu0 }
  0xfe   : > { %v459_v51 = vadd.f32 %v667_v48, %v264_v46  ;;  %v515_v52 = vmax.f32 %v503_v49, 0.0 }
  0xff   : > { %v669_v53 = vpop.f32.mrf.mxu0 }
 0x100   : > { %v508_v54 = vadd.f32 %v681_v29, %v459_v51  ;;  %520 = vst.msk [vmem:[%s201_s20 + $0x8] sm:$0xff] %vm518_vm1, %v515_v52  ;;  %v670_v55 = vadd.f32 %v669_v53, %v668_v50 }
 0x102   : > { %v516_v57 = vmax.f32 %v508_v54, 0.0  ;;  %v462_v58 = vadd.f32 %v670_v55, %v269_v56 }
 0x104   : > { %521 = vst.msk [vmem:[%s201_s20 + $0x10] sm:$0xff] %vm518_vm1, %v516_v57  ;;  %v511_v59 = vadd.f32 %v682_v36, %v462_v58 }
 0x106   : > { %v517_v60 = vmax.f32 %v511_v59, 0.0 }
 0x108   : > { %522 = vst.msk [vmem:[%s201_s20 + $0x18] sm:$0xff] %vm518_vm1, %v517_v60 }
 0x109 PF: > { %s13_s14 = sadd.s32 1, %s759_s14   ;;  %s879_s12 = smov %s755_s13 }
 0x10a   : > { %p10_p5 = scmp.ge.s32.totalorder %s13_s14, 6   ;;  %s880_s13 = smov %s882_s15 }
 0x10c   :  { %12 = sbr.rel (!%p10_p5) target bundleno = 2 (0x2), region = 62 }

// kernel: thisnewnet_forward.22
= control target key start
LH: loop header
LB: loop body
LE: loop exit
PB: predicated region body
PF: predicated region fallthrough
CT: control target
= control target key end

     0   :  { %s475_s12 = smov 0   ;;  %s477_s13 = smov 0   ;;  %s517_s0 = inlined_call_operand.vmem [shape: bf16[16,32], index: 0, kind: input, shape index: {}]   ;;  %s518_s1 = inlined_call_operand.vmem [shape: bf16[4,32,64], index: 1, kind: input, shape index: {}]   ;;  %s519_s2 = inlined_call_operand.vmem [shape: f32[16,1], index: 2, kind: input, shape index: {}]   ;;  %s520_s3 = inlined_call_operand.vmem [shape: f32[4,16,64], index: 3, kind: output, shape index: {}]  }
   0x1   :  { %s479_s14 = smov 0  }
   0x2 LB: > { %s25_s15 = sadd.s32 1, %s446_s13  ;;  %p373_p0 = scmp.ge.s32.totalorder %s450_s14, 1  ;;  %s450_s14 = sphi %s479_s14, %s13_s14   ;;  %s446_s13 = sphi %s477_s13, %s522_s13   ;;  %s442_s12 = sphi %s475_s12, %s521_s12  }
   0x3   : > { %p27_p1 = scmp.ge.s32.totalorder %s25_s15, 4  ;;  %p156_p2 = scmp.lt.s32.totalorder %s450_s14, 5 }
   0x5   : > { %s524_s15 = smov (%p27_p1, %s25_s15), 0  ;;  %p157_p3 = pnand %p373_p0, %p156_p2 }
   0x6   : > { %p186_p4 = scmp.lt.s32.totalorder (!%p157_p3), %s442_s12, 3 }
   0x7   : > { %160 = sbr.rel (%p157_p3) target bundleno = 223 (0xdf), region = 32 }
   0xc   : > { %v452_v0 = vmov 0.0   ;;  %vm453_vm0 = vmmov 0   ;;  %v209_v1 = vld [vmem:[%s519_s2] sm:$0xff]  ;;  %s526_s12 = smov (!%p186_p4, %s442_s12), 3  ;;  %v454_v2 = vmov 0   ;;  %v210_v3 = vld [vmem:[%s519_s2 + $0x8] sm:$0xff] }
   0xd   : > { %389 = vmatprep.subr.bf16.mxu0 %v452_v0  ;;  %393 = vmatprep.mubr.msk.bf16.mxu0 %vm453_vm0, %v452_v0  ;;  %s384_s18 = sshll.u32 %s526_s12, 4  ;;  %v427_v6 = vld [vmem:[%s517_s0] sm:$0xff]   ;;  %vm238_vm1 = vcmask 261120   ;;  %vm283_vm2 = vcmask 523264  }
   0xe   : > { %424 = vset.pattern.permute.xlu0 %v454_v2  ;;  %s193_s23 = scalar_lea.vmem %s518_s1, %s384_s18  ;;  %s201_s28 = scalar_lea.vmem %s520_s3, %s384_s18 }
   0xf   : > { %213 = vperm.xlu0 %424, %v209_v1   ;;  %v425_v4 = vld [vmem:[%s193_s23 + $0x8] sm:$0xff]   ;;  %v426_v5 = vld [vmem:[%s193_s23] sm:$0xff]  }
  0x10   : > { %390 = vmatpush3.bf16.msra.mxu0 %v425_v4 }
  0x11   : > { %391 = vmatprep.subr.bf16.mxu0 %v452_v0 }
  0x13   : > { %218 = vperm.xlu0 %424, %v210_v3  }
  0x14   : > { %392 = vmatpush3.bf16.msra.mxu0 %v426_v5 }
  0x17   : > { %394 = vmatmul.mubr.msk.bf16.vlgmr.msra.gmra.mxu0 %vm238_vm1, %v427_v6 }
  0x8a   : > { %v214_v7 = vpop.permute.xlu0 %213 }
  0x8e   : > { %v219_v11 = vpop.permute.xlu0 %218 }
  0xd7   : > { %v276_v8 = vpop.f32.mrf.mxu0 }
  0xd8   : > { %v277_v9 = vadd.f32 %v276_v8, %v214_v7 }
  0xd9   : > { %v395_v10 = vpop.f32.mrf.mxu0 }
  0xda   : > { %284 = vst.msk [vmem:[%s201_s28] sm:$0xff] %vm283_vm2, %v277_v9 }
  0xdb   : > { %v279_v12 = vpop.f32.mrf.mxu0 }
  0xdc   : > { %v280_v13 = vadd.f32 %v279_v12, %v219_v11 }
  0xdd   : > { %v396_v14 = vpop.f32.mrf.mxu0 }
  0xde   : > { %285 = vst.msk [vmem:[%s201_s28 + $0x8] sm:$0xff] %vm283_vm2, %v280_v13 }
  0xdf PF: > { %s13_s14 = sadd.s32 1, %s450_s14   ;;  %s521_s12 = smov %s446_s13 }
  0xe0   : > { %p10_p5 = scmp.ge.s32.totalorder %s13_s14, 6   ;;  %s522_s13 = smov %s524_s15 }
  0xe2   :  { %12 = sbr.rel (!%p10_p5) target bundleno = 2 (0x2), region = 62 }

// kernel: thisnewnet_forward.23
= control target key start
LH: loop header
LB: loop body
LE: loop exit
PB: predicated region body
PF: predicated region fallthrough
CT: control target
= control target key end

     0   :  { %s716_s12 = smov 0   ;;  %s718_s13 = smov 0   ;;  %s788_s0 = inlined_call_operand.vmem [shape: bf16[16,288], index: 0, kind: input, shape index: {}]   ;;  %s789_s1 = inlined_call_operand.vmem [shape: bf16[4,288,64], index: 1, kind: input, shape index: {}]   ;;  %s790_s2 = inlined_call_operand.vmem [shape: f32[16,1], index: 2, kind: input, shape index: {}]   ;;  %s791_s3 = inlined_call_operand.vmem [shape: f32[4,16,64], index: 3, kind: output, shape index: {}]  }
   0x1   :  { %s720_s14 = smov 0  }
   0x2 LB: > { %s25_s15 = sadd.s32 1, %s687_s13  ;;  %p556_p0 = scmp.ge.s32.totalorder %s691_s14, 1  ;;  %s691_s14 = sphi %s720_s14, %s13_s14   ;;  %s687_s13 = sphi %s718_s13, %s793_s13   ;;  %s683_s12 = sphi %s716_s12, %s792_s12  }
   0x3   : > { %p27_p1 = scmp.ge.s32.totalorder %s25_s15, 4  ;;  %p156_p2 = scmp.lt.s32.totalorder %s691_s14, 5 }
   0x5   : > { %s795_s15 = smov (%p27_p1, %s25_s15), 0  ;;  %p157_p3 = pnand %p556_p0, %p156_p2 }
   0x6   : > { %p186_p4 = scmp.lt.s32.totalorder (!%p157_p3), %s683_s12, 3 }
   0x7   : > { %160 = sbr.rel (%p157_p3) target bundleno = 257 (0x101), region = 32 }
   0xc   : > { %v693_v0 = vmov 0.0   ;;  %v667_v1 = vld [vmem:[%s788_s0 + $0x4] ss:$12 sps:$4 sm:$0xff]   ;;  %s797_s12 = smov (!%p186_p4, %s683_s12), 3  ;;  %vm694_vm0 = vmmov 0   ;;  %v695_v2 = vmov 0  }
   0xd   : > { %610 = vmatprep.subr.bf16.mxu1 %v693_v0  ;;  %614 = vmatprep.mubr.msk.bf16.mxu1 %vm694_vm0, %v693_v0  ;;  %v243_v3 = vld [vmem:[%s790_s2] sm:$0xff]  ;;  %s618_s20 = smul.u32 144, %s797_s12  ;;  %v244_v4 = vld [vmem:[%s790_s2 + $0x8] sm:$0xff]  ;;  %vm378_vm1 = vcmask 261120   ;;  %s584_s30 = sshll.u32 %s797_s12, 4  ;;  %vm466_vm2 = vcmask 523264  }
   0xe   : > { %414 = vmatprep.mubr.bf16.mxu0 %v667_v1  ;;  %646 = vset.pattern.permute.xlu0 %v695_v2  ;;  %v668_v19 = vld [vmem:[%s788_s0 + $0x8] ss:$12 sps:$4 sm:$0xff]   ;;  %v665_v24 = vld [vmem:[%s788_s0] ss:$12 sps:$4 sm:$0xff]   ;;  %s201_s6 = scalar_lea.vmem %s791_s3, %s584_s30 }
   0xf   : > { %247 = vperm.xlu0 %646, %v243_v3   ;;  %s749_s25 = scalar_lea.vmem %s789_s1, %s618_s20 }
  0x10   : > { %v647_v5 = vld [vmem:[%s749_s25 + $0x78] sm:$0xff]   ;;  %v649_v7 = vld [vmem:[%s749_s25 + $0x70] sm:$0xff]   ;;  %v651_v9 = vld [vmem:[%s749_s25 + $0x68] sm:$0xff]  }
  0x11   : > { %v648_v6 = vld [vmem:[%s749_s25 + $0x38] sm:$0xff]   ;;  %585 = vmatprep.subr.bf16.mxu0 %v647_v5  ;;  %v650_v8 = vld [vmem:[%s749_s25 + $0x30] sm:$0xff]   ;;  %v652_v10 = vld [vmem:[%s749_s25 + $0x28] sm:$0xff]  }
  0x12   : > { %586 = vmatpush3.bf16.msra.mxu0 %v648_v6  ;;  %v653_v11 = vld [vmem:[%s749_s25 + $0x60] sm:$0xff]   ;;  %v655_v13 = vld [vmem:[%s749_s25 + $0x58] sm:$0xff]   ;;  %v661_v14 = vld [vmem:[%s749_s25 + $0x88] sm:$0xff]  }
  0x13   : > { %252 = vperm.xlu0 %646, %v244_v4   ;;  %587 = vmatprep.subr.bf16.mxu0 %v649_v7  ;;  %v654_v12 = vld [vmem:[%s749_s25 + $0x20] sm:$0xff]   ;;  %v656_v15 = vld [vmem:[%s749_s25 + $0x18] sm:$0xff]   ;;  %v657_v16 = vld [vmem:[%s749_s25 + $0x50] sm:$0xff]  }
  0x14   : > { %611 = vmatpush3.bf16.msra.mxu1 %v661_v14  ;;  %v664_v17 = vld [vmem:[%s749_s25 + $0x80] sm:$0xff]   ;;  %v658_v18 = vld [vmem:[%s749_s25 + $0x10] sm:$0xff]   ;;  %v659_v20 = vld [vmem:[%s749_s25 + $0x48] sm:$0xff]  }
  0x15   : > { %612 = vmatprep.subr.bf16.mxu1 %v693_v0  ;;  %v660_v21 = vld [vmem:[%s749_s25 + $0x8] sm:$0xff]   ;;  %v662_v22 = vld [vmem:[%s749_s25 + $0x40] sm:$0xff]  }
  0x16   : > { %588 = vmatpush3.bf16.msra.mxu0 %v650_v8  ;;  %v663_v23 = vld [vmem:[%s749_s25] sm:$0xff]  }
  0x17   : > { %589 = vmatprep.subr.bf16.mxu0 %v651_v9 }
  0x18   : > { %613 = vmatpush3.bf16.msra.mxu1 %v664_v17 }
  0x1a   : > { %590 = vmatpush3.bf16.msra.mxu0 %v652_v10 }
  0x1b   : > { %591 = vmatprep.subr.bf16.mxu0 %v653_v11  ;;  %615 = vmatmul.mubr.msk.bf16.vlgmr.msra.gmra.mxu1 %vm378_vm1, %v668_v19 }
  0x1e   : > { %592 = vmatpush3.bf16.msra.mxu0 %v654_v12 }
  0x1f   : > { %593 = vmatprep.subr.bf16.mxu0 %v655_v13 }
  0x22   : > { %594 = vmatpush3.bf16.msra.mxu0 %v656_v15 }
  0x23   : > { %595 = vmatprep.subr.bf16.mxu0 %v657_v16 }
  0x26   : > { %596 = vmatpush3.bf16.msra.mxu0 %v658_v18 }
  0x27   : > { %597 = vmatprep.subr.bf16.mxu0 %v659_v20 }
  0x2a   : > { %598 = vmatpush3.bf16.msra.mxu0 %v660_v21 }
  0x2b   : > { %599 = vmatprep.subr.bf16.mxu0 %v662_v22 }
  0x2e   : > { %600 = vmatpush3.bf16.msra.mxu0 %v663_v23 }
  0x31   : > { %415 = vmatmul.mubr.bf16.vlgmr.msra.gmra.mxu0 %v665_v24 }
  0x8a   : > { %v248_v30 = vpop.permute.xlu0 %247 }
  0x8e   : > { %v253_v38 = vpop.permute.xlu0 %252 }
  0xdb   : > { %v457_v25 = vpop.f32.mrf.mxu1 }
  0xdd   : > { %v616_v26 = vpop.f32.mrf.mxu1 }
  0xdf   : > { %v460_v27 = vpop.f32.mrf.mxu1 }
  0xe1   : > { %v617_v28 = vpop.f32.mrf.mxu1 }
  0xf1   : > { %v601_v29 = vpop.f32.mrf.mxu0 }
  0xf3   : > { %v602_v31 = vpop.f32.mrf.mxu0 }
  0xf4   : > { %v603_v32 = vadd.f32 %v602_v31, %v601_v29 }
  0xf5   : > { %v604_v33 = vpop.f32.mrf.mxu0 }
  0xf6   : > { %v417_v34 = vadd.f32 %v603_v32, %v248_v30 }
  0xf7   : > { %v605_v35 = vpop.f32.mrf.mxu0 }
  0xf8   : > { %v458_v36 = vadd.f32 %v457_v25, %v417_v34  ;;  %v606_v37 = vadd.f32 %v605_v35, %v604_v33 }
  0xfa   : > { %v464_v39 = vmax.f32 %v458_v36, 0.0  ;;  %v420_v40 = vadd.f32 %v606_v37, %v253_v38 }
  0xfc   : > { %467 = vst.msk [vmem:[%s201_s6] sm:$0xff] %vm466_vm2, %v464_v39  ;;  %v461_v41 = vadd.f32 %v460_v27, %v420_v40 }
  0xfe   : > { %v465_v42 = vmax.f32 %v461_v41, 0.0 }
 0x100   : > { %468 = vst.msk [vmem:[%s201_s6 + $0x8] sm:$0xff] %vm466_vm2, %v465_v42 }
 0x101 PF: > { %s13_s14 = sadd.s32 1, %s691_s14   ;;  %s792_s12 = smov %s687_s13 }
 0x102   : > { %p10_p5 = scmp.ge.s32.totalorder %s13_s14, 6   ;;  %s793_s13 = smov %s795_s15 }
 0x104   :  { %12 = sbr.rel (!%p10_p5) target bundleno = 2 (0x2), region = 62 }

// kernel: thisnewnet_forward.25
= control target key start
LH: loop header
LB: loop body
LE: loop exit
PB: predicated region body
PF: predicated region fallthrough
CT: control target
= control target key end

     0   :  { %s454_s12 = smov 0   ;;  %s456_s13 = smov 0   ;;  %s493_s0 = inlined_call_operand.vmem [shape: bf16[8,16], index: 0, kind: input, shape index: {}]   ;;  %s494_s1 = inlined_call_operand.vmem [shape: bf16[4,16,256], index: 1, kind: input, shape index: {}]   ;;  %s495_s2 = inlined_call_operand.vmem [shape: f32[8,1], index: 2, kind: input, shape index: {}]   ;;  %s496_s3 = inlined_call_operand.vmem [shape: f32[4,8,256], index: 3, kind: output, shape index: {}]  }
   0x1   :  { %s458_s14 = smov 0  }
   0x2 LB: > { %s25_s15 = sadd.s32 1, %s427_s13  ;;  %p368_p0 = scmp.ge.s32.totalorder %s431_s14, 1  ;;  %s431_s14 = sphi %s458_s14, %s13_s14   ;;  %s427_s13 = sphi %s456_s13, %s498_s13   ;;  %s423_s12 = sphi %s454_s12, %s497_s12  }
   0x3   : > { %p27_p1 = scmp.ge.s32.totalorder %s25_s15, 4  ;;  %p158_p2 = scmp.lt.s32.totalorder %s431_s14, 5 }
   0x5   : > { %s500_s15 = smov (%p27_p1, %s25_s15), 0  ;;  %p159_p3 = pnand %p368_p0, %p158_p2 }
   0x6   : > { %p191_p4 = scmp.lt.s32.totalorder (!%p159_p3), %s423_s12, 3 }
   0x7   : > { %162 = sbr.rel (%p159_p3) target bundleno = 219 (0xdb), region = 32 }
   0xc   : > { %v214_v0 = vld [vmem:[%s495_s2] sm:$0xff]  ;;  %v433_v1 = vmov 0   ;;  %s502_s12 = smov (!%p191_p4, %s423_s12), 3  ;;  %vm230_vm0 = vcmask 130048  }
   0xd   : > { %266 = vmatprep.mubr.bf16.mxu0 %v433_v1  ;;  %405 = vset.pattern.permute.xlu0 %v433_v1  ;;  %s378_s18 = sshll.u32 %s502_s12, 4  ;;  %v211_v4 = vld [vmem:[%s493_s0] sm:$0xf] }
   0xe   : > { %217 = vperm.xlu0 %405, %v214_v0   ;;  %s198_s21 = scalar_lea.vmem %s494_s1, %s378_s18  ;;  %s208_s26 = scalar_lea.vmem %s496_s3, %s378_s18 }
   0xf   : > { %v406_v2 = vld [vmem:[%s198_s21 + $0x4] ss:$8 sps:$4 sm:$0xff]   ;;  %v408_v3 = vld [vmem:[%s198_s21] ss:$8 sps:$4 sm:$0xff]  }
  0x10   : > { %248 = vmatprep.subr.bf16.mxu0 %v406_v2 }
  0x11   : > { %249 = vmatpush1.bf16.msra.mxu0 %v408_v3 }
  0x14   : > { %375 = vmatmul.mubr.msk.bf16.vlgmr.msra.gmra.mxu0 %vm230_vm0, %v211_v4 }
  0x89   : > { %v218_v5 = vpop.permute.xlu0 %217 }
  0xd4   : > { %v268_v6 = vpop.f32.mrf.mxu0 }
  0xd5   : > { %v269_v7 = vadd.f32 %v268_v6, %v218_v5 }
  0xd6   : > { %v270_v8 = vpop.f32.mrf.mxu0 }
  0xd7   : > { %275 = vst [vmem:[%s208_s26] sm:$0xff] %v269_v7  ;;  %v271_v9 = vadd.f32 %v270_v8, %v218_v5 }
  0xd8   : > { %v272_v10 = vpop.f32.mrf.mxu0 }
  0xd9   : > { %276 = vst [vmem:[%s208_s26 + $0x8] sm:$0xff] %v271_v9 }
  0xda   : > { %v273_v11 = vpop.f32.mrf.mxu0 }
  0xdb PF: > { %s13_s14 = sadd.s32 1, %s431_s14   ;;  %s497_s12 = smov %s427_s13 }
  0xdc   : > { %p10_p5 = scmp.ge.s32.totalorder %s13_s14, 6   ;;  %s498_s13 = smov %s500_s15 }
  0xde   :  { %12 = sbr.rel (!%p10_p5) target bundleno = 2 (0x2), region = 62 }

// kernel: thisnewnet_forward.26
= control target key start
LH: loop header
LB: loop body
LE: loop exit
PB: predicated region body
PF: predicated region fallthrough
CT: control target
= control target key end

     0   :  { %s601_s12 = smov 0   ;;  %s603_s13 = smov 0   ;;  %s664_s0 = inlined_call_operand.vmem [shape: bf16[8,144], index: 0, kind: input, shape index: {}]   ;;  %s665_s1 = inlined_call_operand.vmem [shape: bf16[4,144,256], index: 1, kind: input, shape index: {}]   ;;  %s666_s2 = inlined_call_operand.vmem [shape: f32[8,1], index: 2, kind: input, shape index: {}]   ;;  %s667_s3 = inlined_call_operand.vmem [shape: f32[4,8,256], index: 3, kind: output, shape index: {}]  }
   0x1   :  { %s605_s14 = smov 0  }
   0x2 LB: > { %s25_s15 = sadd.s32 1, %s574_s13  ;;  %p472_p0 = scmp.ge.s32.totalorder %s578_s14, 1  ;;  %s578_s14 = sphi %s605_s14, %s13_s14   ;;  %s574_s13 = sphi %s603_s13, %s669_s13   ;;  %s570_s12 = sphi %s601_s12, %s668_s12  }
   0x3   : > { %p27_p1 = scmp.ge.s32.totalorder %s25_s15, 4  ;;  %p158_p2 = scmp.lt.s32.totalorder %s578_s14, 5 }
   0x5   : > { %s671_s15 = smov (%p27_p1, %s25_s15), 0  ;;  %p159_p3 = pnand %p472_p0, %p158_p2 }
   0x6   : > { %p191_p4 = scmp.lt.s32.totalorder (!%p159_p3), %s570_s12, 3 }
   0x7   : > { %162 = sbr.rel (%p159_p3) target bundleno = 253 (0xfd), region = 32 }
   0xc   : > { %v211_v0 = vld [vmem:[%s664_s0] sm:$0xff]  ;;  %vm332_vm0 = vcmask 130048   ;;  %v580_v3 = vmov 0   ;;  %s673_s12 = smov (!%p191_p4, %s570_s12), 3 }
   0xd   : > { %v230_v1 = vld [vmem:[%s666_s2] sm:$0xff]  ;;  %v477_v2 = vcombine.high %v211_v0, %v211_v0  ;;  %526 = vset.pattern.permute.xlu0 %v580_v3  ;;  %s500_s20 = smul.u32 144, %s673_s12  ;;  %v476_v22 = vcombine.low %v211_v0, %v211_v0  ;;  %s499_s24 = sshll.u32 %s673_s12, 4 }
   0xe   : > { %233 = vperm.xlu0 %526, %v230_v1   ;;  %s208_s27 = scalar_lea.vmem %s667_s3, %s499_s24 }
   0xf   : > { %496 = vmatprep.mubr.msk.bf16.mxu0 %vm332_vm0, %v477_v2  ;;  %s631_s23 = scalar_lea.vmem %s665_s1, %s500_s20 }
  0x10   : > { %v527_v4 = vld [vmem:[%s631_s23 + $0x74] ss:$8 sps:$4 sm:$0xff]   ;;  %v529_v5 = vld [vmem:[%s631_s23 + $0x70] ss:$8 sps:$4 sm:$0xff]   ;;  %v530_v6 = vld [vmem:[%s631_s23 + $0x64] ss:$8 sps:$4 sm:$0xff]  }
  0x11   : > { %336 = vmatprep.subr.bf16.mxu0 %v527_v4  ;;  %v532_v7 = vld [vmem:[%s631_s23 + $0x60] ss:$8 sps:$4 sm:$0xff]   ;;  %v533_v8 = vld [vmem:[%s631_s23 + $0x54] ss:$8 sps:$4 sm:$0xff]   ;;  %v535_v9 = vld [vmem:[%s631_s23 + $0x50] ss:$8 sps:$4 sm:$0xff]  }
  0x12   : > { %337 = vmatpush1.bf16.msra.mxu0 %v529_v5  ;;  %v536_v10 = vld [vmem:[%s631_s23 + $0x44] ss:$8 sps:$4 sm:$0xff]   ;;  %v538_v11 = vld [vmem:[%s631_s23 + $0x40] ss:$8 sps:$4 sm:$0xff]   ;;  %v539_v12 = vld [vmem:[%s631_s23 + $0x34] ss:$8 sps:$4 sm:$0xff]  }
  0x13   : > { %338 = vmatprep.subr.bf16.mxu0 %v530_v6  ;;  %v541_v13 = vld [vmem:[%s631_s23 + $0x30] ss:$8 sps:$4 sm:$0xff]   ;;  %v542_v14 = vld [vmem:[%s631_s23 + $0x24] ss:$8 sps:$4 sm:$0xff]   ;;  %v544_v15 = vld [vmem:[%s631_s23 + $0x20] ss:$8 sps:$4 sm:$0xff]  }
  0x14   : > { %v545_v16 = vld [vmem:[%s631_s23 + $0x14] ss:$8 sps:$4 sm:$0xff]   ;;  %v547_v17 = vld [vmem:[%s631_s23 + $0x10] ss:$8 sps:$4 sm:$0xff]   ;;  %v548_v18 = vld [vmem:[%s631_s23 + $0x4] ss:$8 sps:$4 sm:$0xff]  }
  0x15   : > { %v550_v19 = vld [vmem:[%s631_s23] ss:$8 sps:$4 sm:$0xff]   ;;  %v551_v20 = vld [vmem:[%s631_s23 + $0x84] ss:$8 sps:$4 sm:$0xff]  }
  0x16   : > { %339 = vmatpush1.bf16.msra.mxu0 %v532_v7  ;;  %v553_v21 = vld [vmem:[%s631_s23 + $0x80] ss:$8 sps:$4 sm:$0xff]  }
  0x17   : > { %340 = vmatprep.subr.bf16.mxu0 %v533_v8 }
  0x1a   : > { %341 = vmatpush1.bf16.msra.mxu0 %v535_v9 }
  0x1b   : > { %342 = vmatprep.subr.bf16.mxu0 %v536_v10 }
  0x1e   : > { %343 = vmatpush1.bf16.msra.mxu0 %v538_v11 }
  0x1f   : > { %344 = vmatprep.subr.bf16.mxu0 %v539_v12 }
  0x22   : > { %345 = vmatpush1.bf16.msra.mxu0 %v541_v13 }
  0x23   : > { %346 = vmatprep.subr.bf16.mxu0 %v542_v14 }
  0x26   : > { %347 = vmatpush1.bf16.msra.mxu0 %v544_v15 }
  0x27   : > { %348 = vmatprep.subr.bf16.mxu0 %v545_v16 }
  0x2a   : > { %349 = vmatpush1.bf16.msra.mxu0 %v547_v17 }
  0x2b   : > { %350 = vmatprep.subr.bf16.mxu0 %v548_v18 }
  0x2e   : > { %351 = vmatpush1.bf16.msra.mxu0 %v550_v19 }
  0x2f   : > { %366 = vmatprep.subr.bf16.mxu0 %v551_v20 }
  0x32   : > { %367 = vmatpush2.bf16.msra.mxu0 %v553_v21 }
  0x35   : > { %369 = vmatmul.mubr.bf16.vlgmr.msra.gmra.mxu0 %v476_v22 }
  0x89   : > { %v234_v23 = vpop.permute.xlu0 %233 }
  0xf5   : > { %v370_v24 = vpop.f32.mrf.mxu0 }
  0xf6   : > { %v371_v25 = vadd.f32 %v370_v24, %v234_v23 }
  0xf7   : > { %v372_v26 = vpop.f32.mrf.mxu0 }
  0xf8   : > { %v377_v27 = vmax.f32 %v371_v25, 0.0  ;;  %v373_v28 = vadd.f32 %v372_v26, %v234_v23 }
  0xf9   : > { %v374_v29 = vpop.f32.mrf.mxu0 }
  0xfa   : > { %379 = vst [vmem:[%s208_s27] sm:$0xff] %v377_v27  ;;  %v378_v30 = vmax.f32 %v373_v28, 0.0 }
  0xfb   : > { %v375_v31 = vpop.f32.mrf.mxu0 }
  0xfc   : > { %380 = vst [vmem:[%s208_s27 + $0x8] sm:$0xff] %v378_v30 }
  0xfd PF: > { %s13_s14 = sadd.s32 1, %s578_s14   ;;  %s668_s12 = smov %s574_s13 }
  0xfe   : > { %p10_p5 = scmp.ge.s32.totalorder %s13_s14, 6   ;;  %s669_s13 = smov %s671_s15 }
 0x100   :  { %12 = sbr.rel (!%p10_p5) target bundleno = 2 (0x2), region = 62 }

// kernel: thisnewnet_forward.28
= control target key start
LH: loop header
LB: loop body
LE: loop exit
PB: predicated region body
PF: predicated region fallthrough
CT: control target
= control target key end

     0   :  { %s477_s14 = smov 0   ;;  %s479_s15 = smov 0   ;;  %s517_s0 = inlined_call_operand.vmem [shape: bf16[1,8], index: 0, kind: input, shape index: {}]   ;;  %s518_s1 = inlined_call_operand.vmem [shape: bf16[4,8,256], index: 1, kind: input, shape index: {}]   ;;  %s519_s2 = inlined_call_operand.<no memory space> [shape: f32[1,1], index: 2, kind: input, shape index: {}]   ;;  %s520_s3 = inlined_call_operand.vmem [shape: f32[4,1,256], index: 3, kind: output, shape index: {}]  }
   0x1   :  { %v8_v0 = vstv %s519_s2  ;;  %s481_s16 = smov 0  }
   0x2   :  { %9 = vst [vmem:[#allocation2] sm:$0x1] %v8_v0 }
   0x3 LB: > { %s27_s2 = sadd.s32 1, %s446_s15  ;;  %p388_p0 = scmp.ge.s32.totalorder %s450_s16, 1  ;;  %s450_s16 = sphi %s481_s16, %s15_s16   ;;  %s446_s15 = sphi %s479_s15, %s522_s15   ;;  %s442_s14 = sphi %s477_s14, %s521_s14  }
   0x4   : > { %p29_p1 = scmp.ge.s32.totalorder %s27_s2, 4  ;;  %p160_p2 = scmp.lt.s32.totalorder %s450_s16, 5 }
   0x6   : > { %s524_s2 = smov (%p29_p1, %s27_s2), 0  ;;  %p161_p3 = pnand %p388_p0, %p160_p2 }
   0x7   : > { %p192_p4 = scmp.lt.s32.totalorder (!%p161_p3), %s442_s14, 3 }
   0x8   : > { %164 = sbr.rel (%p161_p3) target bundleno = 227 (0xe3), region = 32 }
   0xd   : > { %v452_v1 = vmov 0   ;;  %v213_v2 = vld [vmem:[#allocation2] sm:$0x1]  ;;  %s526_s14 = smov (!%p192_p4, %s442_s14), 3  ;;  %vm232_vm0 = vcmask 1043456   ;;  %vm228_vm1 = vcmask 64512   ;;  %v219_v8 = vlaneseq }
   0xe   : > { %271 = vmatprep.mubr.bf16.mxu0 %v452_v1  ;;  %425 = vset.pattern.permute.xlu0 %v452_v1  ;;  %s398_s17 = sshll.u32 %s526_s14, 3  ;;  %v211_v7 = vld [vmem:[%s517_s0] sm:$0x1]  ;;  %v453_v11 = vmov 1966171168   ;;  %s391_s23 = sshll.u32 %s526_s14, 1 }
   0xf   : > { %216 = vperm.xlu0 %425, %v213_v2   ;;  %s199_s20 = scalar_lea.vmem %s518_s1, %s398_s17  ;;  %v220_v9 = vshrl.u32 %v219_v8, 7  ;;  %v284_v12 = vunpack.c.l.s4 %v453_v11  ;;  %s208_s26 = scalar_lea.vmem %s520_s3, %s391_s23  ;;  %vm300_vm2 = vcmp.lt.s32.totalorder %v219_v8, 256 }
  0x10   : > { %v212_v3 = vld [vmem:[%s199_s20] sm:$0xff] }
  0x11   : > { %v393_v4 = vcombine.high %v212_v3, %v212_v3  ;;  %v392_v5 = vcombine.low %v212_v3, %v212_v3  ;;  %v221_v10 = vsub.s32 0, %v220_v9  ;;  %v285_v15 = vunpack.c.0.s8 %v284_v12 }
  0x13   : > { %394 = vmatprep.subr.msk.bf16.mxu0 %vm232_vm0, %v393_v4  ;;  %v234_v6 = vsel %vm232_vm0, %v392_v5, 0  ;;  %v288_v20 = vsub.s32 %v285_v15, %v220_v9 }
  0x14   : > { %254 = vmatpush1.bf16.msra.mxu0 %v234_v6 }
  0x17   : > { %395 = vmatmul.mubr.msk.bf16.vlgmr.msra.gmra.mxu0 %vm228_vm1, %v211_v7 }
  0x8a   : > { %v217_v13 = vpop.permute.xlu0 %216 }
  0x8b   : > { %v222_v14 = vrot.slane %v217_v13, %v221_v10 }
  0xd7   : > { %v273_v16 = vpop.f32.mrf.mxu0 }
  0xd8   : > { %v274_v18 = vadd.f32 %v273_v16, %v222_v14 }
  0xd9   : > { %v275_v17 = vpop.f32.mrf.mxu0 }
  0xda   : > { %v276_v19 = vadd.f32 %v275_v17, %v222_v14 }
  0xdb   : > { %v277_v21 = vpop.f32.mrf.mxu0 }
  0xdc   : > { %v282_v22 = vcombine.low %v274_v18, %v276_v19 }
  0xdd   : > { %v278_v23 = vpop.f32.mrf.mxu0 }
  0xde   : > { %v289_v24 = vrot.slane %v282_v22, %v288_v20 }
  0xe0   : > { %v296_v25 = vrot.slane %v289_v24, %v288_v20 }
  0xe2   : > { %302 = vst.msk [vmem:[%s208_s26] sm:$0x3] %vm300_vm2, %v296_v25 }
  0xe3 PF: > { %s15_s16 = sadd.s32 1, %s450_s16   ;;  %s521_s14 = smov %s446_s15 }
  0xe4   : > { %p12_p5 = scmp.ge.s32.totalorder %s15_s16, 6   ;;  %s522_s15 = smov %s524_s2 }
  0xe6   :  { %14 = sbr.rel (!%p12_p5) target bundleno = 3 (0x3), region = 62 }

// kernel: thisnewnet_forward.29
= control target key start
LH: loop header
LB: loop body
LE: loop exit
PB: predicated region body
PF: predicated region fallthrough
CT: control target
= control target key end

     0   :  { %s706_s12 = smov 0   ;;  %s708_s13 = smov 0   ;;  %s790_s0 = inlined_call_operand.vmem [shape: bf16[9,8,81], index: 0, kind: input, shape index: {}]   ;;  %s791_s1 = inlined_call_operand.vmem [shape: bf16[1,16,81,256], index: 1, kind: input, shape index: {}]   ;;  %s792_s2 = inlined_call_operand.vmem [shape: f32[8,1], index: 2, kind: input, shape index: {}]   ;;  %s793_s3 = inlined_call_operand.vmem [shape: f32[1,8,8,256], index: 3, kind: output, shape index: {}]  }
   0x1   :  { %s710_s14 = smov 0   ;;  %s712_s15 = smov 0  }
   0x2   :  { %s714_s16 = smov 0  }
   0x3 LB: > { %s28_s17 = sadd.s32 1, %s673_s14  ;;  %s35_s18 = sadd.s32 1, %s677_s15  ;;  %s681_s16 = sphi %s714_s16, %s13_s16   ;;  %s677_s15 = sphi %s712_s15, %s797_s15   ;;  %s673_s14 = sphi %s710_s14, %s796_s14   ;;  %s669_s13 = sphi %s708_s13, %s795_s13   ;;  %s665_s12 = sphi %s706_s12, %s794_s12  }
   0x4   : > { %p29_p0 = scmp.ge.s32.totalorder %s28_s17, 9  ;;  %p558_p1 = scmp.ge.s32.totalorder %s681_s16, 1 }
   0x5   : > { %p193_p2 = scmp.lt.s32.totalorder %s681_s16, 73 }
   0x6   : > { %s799_s17 = smov (%p29_p0, %s28_s17), 0  ;;  %s801_s18 = smov (!%p29_p0, %s35_s18), %s677_s15 }
   0x7   : > { %p194_p3 = pnand %p558_p1, %p193_p2  ;;  %p37_p4 = scmp.ge.s32.totalorder %s801_s18, 8 }
   0x8   : > { %p238_p5 = scmp.lt.s32.totalorder (!%p194_p3), %s665_s12, 8  ;;  %s242_s19 = sadd.s32 (!%p194_p3), %s665_s12, %s669_s13 }
   0x9   : > { %s803_s18 = smov (%p37_p4, %s801_s18), 0  ;;  %197 = sbr.rel (%p194_p3) target bundleno = 385 (0x181), region = 32 }
   0xa   : > { %p246_p6 = scmp.lt.s32.totalorder (!%p194_p3), %s242_s19, 15  ;;  %p261_p7 = scmp.lt.s32.totalorder (!%p194_p3), %s669_s13, 7 }
   0xb   : > { %p563_p8 = scmp.ne.s32.totalorder (!%p194_p3), %s665_s12, 0 }
   0xe   : > { %s239_s20 = scalar_select %p238_p5, %s665_s12, 8 }
   0xf   : > { %s805_s19 = smov (!%p246_p6, %s242_s19), 15  ;;  %s807_s13 = smov (!%p261_p7, %s669_s13), 7 }
  0x10   : > { %s559_s21 = sshll.u32 %s239_s20, 2  ;;  %s581_s25 = smul.u32 88, %s805_s19 }
  0x11   : > { %s744_s24 = scalar_lea.vmem %s790_s0, %s559_s21  ;;  %s580_s29 = sshll.u32 %s807_s13, 4 }
  0x12   : > { %s749_s28 = scalar_lea.vmem %s791_s1, %s581_s25  ;;  %s754_s5 = scalar_lea.vmem %s793_s3, %s580_s29 }
  0x13   : > { %276 = sbr.rel (%p563_p8) target bundleno = 26 (0x1a), region = 36 }
  0x18   : > { %v683_v0 = vmov 0.0  }
  0x19   : > { %277 = vst [vmem:[#allocation2] sm:$0xff] %v683_v0  ;;  %278 = vst [vmem:[#allocation2 + $0x8] sm:$0xff] %v683_v0 }
  0x1a PF: > { %v292_v1 = vld [vmem:[%s749_s28 + $0x50] sm:$0x11]  ;;  %vm352_vm0 = vcmask 1040384   ;;  %v684_v3 = vmov 0   ;;  %v627_v8 = vld [vmem:[%s749_s28 + $0x44] ss:$8 sps:$4 sm:$0xff]  }
  0x1b   : > { %v575_v2 = vcombine.high %v292_v1, %v292_v1  ;;  %v354_v4 = vsel %vm352_vm0, 65535, %v684_v3  ;;  %v574_v5 = vcombine.low %v292_v1, %v292_v1  ;;  %393 = vmatprep.mubr.bf16.mxu0 %v684_v3  ;;  %v629_v9 = vld [vmem:[%s749_s28 + $0x40] ss:$8 sps:$4 sm:$0xff]   ;;  %v630_v10 = vld [vmem:[%s749_s28 + $0x34] ss:$8 sps:$4 sm:$0xff]   ;;  %vm348_vm1 = vcmask 662528  }
  0x1c   : > { %v632_v11 = vld [vmem:[%s749_s28 + $0x30] ss:$8 sps:$4 sm:$0xff]   ;;  %v633_v12 = vld [vmem:[%s749_s28 + $0x24] ss:$8 sps:$4 sm:$0xff]   ;;  %v635_v13 = vld [vmem:[%s749_s28 + $0x20] ss:$8 sps:$4 sm:$0xff]  }
  0x1d   : > { %v359_v6 = vand.u32 %v575_v2, %v354_v4  ;;  %v356_v7 = vand.u32 %v574_v5, %v354_v4  ;;  %v636_v14 = vld [vmem:[%s749_s28 + $0x14] ss:$8 sps:$4 sm:$0xff]   ;;  %v638_v15 = vld [vmem:[%s749_s28 + $0x10] ss:$8 sps:$4 sm:$0xff]   ;;  %v639_v16 = vld [vmem:[%s749_s28 + $0x4] ss:$8 sps:$4 sm:$0xff]  }
  0x1e   : > { %v641_v17 = vld [vmem:[%s749_s28] ss:$8 sps:$4 sm:$0xff]   ;;  %p577_p9 = scmp.ne.s32.totalorder %s665_s12, 8 }
  0x1f   : > { %365 = vmatprep.subr.bf16.mxu0 %v359_v6  ;;  %v281_v18 = vld [vmem:[%s744_s24] sm:$0xf] }
  0x20   : > { %366 = vmatpush1.bf16.msra.mxu0 %v356_v7  ;;  %v279_v19 = vld [vmem:[#allocation2] sm:$0xff]  ;;  %v280_v21 = vld [vmem:[#allocation2 + $0x8] sm:$0xff] }
  0x21   : > { %367 = vmatprep.subr.bf16.mxu0 %v627_v8 }
  0x24   : > { %368 = vmatpush1.bf16.msra.mxu0 %v629_v9 }
  0x25   : > { %369 = vmatprep.subr.bf16.mxu0 %v630_v10 }
  0x28   : > { %370 = vmatpush1.bf16.msra.mxu0 %v632_v11 }
  0x29   : > { %371 = vmatprep.subr.bf16.mxu0 %v633_v12 }
  0x2c   : > { %372 = vmatpush1.bf16.msra.mxu0 %v635_v13 }
  0x2d   : > { %373 = vmatprep.subr.bf16.mxu0 %v636_v14 }
  0x30   : > { %374 = vmatpush1.bf16.msra.mxu0 %v638_v15 }
  0x31   : > { %375 = vmatprep.subr.bf16.mxu0 %v639_v16 }
  0x34   : > { %376 = vmatpush1.bf16.msra.mxu0 %v641_v17 }
  0x37   : > { %576 = vmatmul.mubr.msk.bf16.vlgmr.msra.gmra.mxu0 %vm348_vm1, %v281_v18 }
  0xf7   : > { %v395_v20 = vpop.f32.mrf.mxu0 }
  0xf8   : > { %v402_v22 = vadd.f32 %v395_v20, %v279_v19 }
  0xf9   : > { %v397_v23 = vpop.f32.mrf.mxu0  ;;  %409 = sbr.rel (%p577_p9) target bundleno = 385 (0x181), region = 40 }
  0xfa   : > { %404 = vst [vmem:[#allocation2] sm:$0xff] %v402_v22  ;;  %v403_v24 = vadd.f32 %v397_v23, %v280_v21 }
  0xfb   : > { %v399_v25 = vpop.f32.mrf.mxu0 }
  0xfc   : > { %405 = vst [vmem:[#allocation2 + $0x8] sm:$0xff] %v403_v24 }
  0xfd   : > { %v400_v26 = vpop.f32.mrf.mxu0 }
  0xfe   : > { %v412_v27 = vld [vmem:[%s792_s2] sm:$0xff]  ;;  %v685_v28 = vmov 0  }
  0xff   : > { %642 = vset.pattern.permute.xlu0 %v685_v28 }
 0x100   : > { %415 = vperm.xlu0 %642, %v412_v27  }
 0x101   : > { %v410_v29 = vld [vmem:[#allocation2] sm:$0xff] }
 0x103   : > { %v411_v30 = vld [vmem:[#allocation2 + $0x8] sm:$0xff] }
 0x17b   : > { %v416_v31 = vpop.permute.xlu0 %415 }
 0x17c   : > { %v418_v32 = vadd.f32 %v416_v31, %v410_v29  ;;  %v419_v33 = vadd.f32 %v416_v31, %v411_v30 }
 0x17e   : > { %v420_v34 = vmax.f32 %v418_v32, 0.0  ;;  %v421_v35 = vmax.f32 %v419_v33, 0.0 }
 0x180   : > { %422 = vst [vmem:[%s754_s5] sm:$0xff] %v420_v34  ;;  %423 = vst [vmem:[%s754_s5 + $0x8] sm:$0xff] %v421_v35 }
 0x181 PF: > { %s13_s16 = sadd.s32 1, %s681_s16   ;;  %s794_s12 = smov %s673_s14 }
 0x182   : > { %p10_p10 = scmp.ge.s32.totalorder %s13_s16, 74   ;;  %s795_s13 = smov %s677_s15 }
 0x183   : > { %s796_s14 = smov %s799_s17  ;;  %s797_s15 = smov %s803_s18 }
 0x184   :  { %12 = sbr.rel (!%p10_p10) target bundleno = 3 (0x3), region = 73 }

// kernel: thisnewnet_forward.30
= control target key start
LH: loop header
LB: loop body
LE: loop exit
PB: predicated region body
PF: predicated region fallthrough
CT: control target
= control target key end

     0   :  { %s587_s12 = smov 0   ;;  %s589_s13 = smov 0   ;;  %s626_s0 = inlined_call_operand.vmem [shape: bf16[1,4,8], index: 0, kind: input, shape index: {}]   ;;  %s627_s1 = inlined_call_operand.vmem [shape: bf16[1,8,8,256], index: 1, kind: input, shape index: {}]   ;;  %s628_s2 = inlined_call_operand.vmem [shape: f32[4,1], index: 2, kind: input, shape index: {}]   ;;  %s629_s3 = inlined_call_operand.vmem [shape: f32[1,8,4,256], index: 3, kind: output, shape index: {}]  }
   0x1   :  { %s591_s14 = smov 0  }
   0x2 LB: > { %s35_s15 = sadd.s32 1, %s559_s13  ;;  %p499_p0 = scmp.ge.s32.totalorder %s563_s14, 1  ;;  %s563_s14 = sphi %s591_s14, %s13_s14   ;;  %s559_s13 = sphi %s589_s13, %s631_s13   ;;  %s555_s12 = sphi %s587_s12, %s630_s12  }
   0x3   : > { %p37_p1 = scmp.ge.s32.totalorder %s35_s15, 8  ;;  %p193_p2 = scmp.lt.s32.totalorder %s563_s14, 9 }
   0x5   : > { %s633_s15 = smov (%p37_p1, %s35_s15), 0  ;;  %p194_p3 = pnand %p499_p0, %p193_p2 }
   0x6   : > { %p246_p4 = scmp.lt.s32.totalorder (!%p194_p3), %s555_s12, 7 }
   0x7   : > { %197 = sbr.rel (%p194_p3) target bundleno = 224 (0xe0), region = 32 }
   0xc   : > { %v565_v0 = vmov 0   ;;  %v348_v1 = vld [vmem:[%s628_s2] sm:$0xf]  ;;  %s635_s12 = smov (!%p246_p4, %s555_s12), 7  ;;  %vm290_vm0 = vcmask 1043456   ;;  %vm286_vm1 = vcmask 64512   ;;  %v356_v9 = vlaneseq }
   0xd   : > { %329 = vmatprep.mubr.bf16.mxu0 %v565_v0  ;;  %538 = vset.pattern.permute.xlu0 %v565_v0  ;;  %s510_s18 = sshll.u32 %s635_s12, 3  ;;  %v279_v6 = vld [vmem:[%s626_s0] sm:$0x3]  ;;  %v566_v7 = vmov 839922192  }
   0xe   : > { %351 = vperm.xlu0 %538, %v348_v1   ;;  %s255_s21 = scalar_lea.vmem %s627_s1, %s510_s18  ;;  %v354_v8 = vunpack.c.l.s4 %v566_v7  ;;  %v357_v11 = vshrl.u32 %v356_v9, 7  ;;  %s270_s26 = scalar_lea.vmem %s629_s3, %s510_s18 }
   0xf   : > { %v280_v2 = vld [vmem:[%s255_s21] sm:$0xff] }
  0x10   : > { %v505_v3 = vcombine.high %v280_v2, %v280_v2  ;;  %v504_v4 = vcombine.low %v280_v2, %v280_v2  ;;  %v355_v10 = vunpack.c.0.s8 %v354_v8 }
  0x12   : > { %506 = vmatprep.subr.msk.bf16.mxu0 %vm290_vm0, %v505_v3  ;;  %v292_v5 = vsel %vm290_vm0, %v504_v4, 0  ;;  %v358_v12 = vsub.s32 %v355_v10, %v357_v11 }
  0x13   : > { %312 = vmatpush1.bf16.msra.mxu0 %v292_v5 }
  0x16   : > { %507 = vmatmul.mubr.msk.bf16.vlgmr.msra.gmra.mxu0 %vm286_vm1, %v279_v6 }
  0x89   : > { %v352_v13 = vpop.permute.xlu0 %351 }
  0x8a   : > { %v359_v15 = vrot.slane %v352_v13, %v358_v12 }
  0xd6   : > { %v331_v14 = vpop.f32.mrf.mxu0 }
  0xd8   : > { %v333_v16 = vpop.f32.mrf.mxu0 }
  0xd9   : > { %v340_v17 = vcombine.low %v331_v14, %v333_v16 }
  0xda   : > { %v335_v18 = vpop.f32.mrf.mxu0 }
  0xdb   : > { %v361_v19 = vadd.f32 %v359_v15, %v340_v17 }
  0xdc   : > { %v336_v20 = vpop.f32.mrf.mxu0 }
  0xdd   : > { %v362_v21 = vmax.f32 %v361_v19, 0.0 }
  0xdf   : > { %363 = vst [vmem:[%s270_s26] sm:$0xff] %v362_v21 }
  0xe0 PF: > { %s13_s14 = sadd.s32 1, %s563_s14   ;;  %s630_s12 = smov %s559_s13 }
  0xe1   : > { %p10_p5 = scmp.ge.s32.totalorder %s13_s14, 10   ;;  %s631_s13 = smov %s633_s15 }
  0xe3   :  { %12 = sbr.rel (!%p10_p5) target bundleno = 2 (0x2), region = 73 }

// kernel: thisnewnet_forward.31
= control target key start
LH: loop header
LB: loop body
LE: loop exit
PB: predicated region body
PF: predicated region fallthrough
CT: control target
= control target key end

     0   :  { %s733_s14 = smov 0   ;;  %s735_s15 = smov 0   ;;  %s820_s0 = inlined_call_operand.vmem [shape: bf16[5,1,100], index: 0, kind: input, shape index: {}]   ;;  %s821_s1 = inlined_call_operand.vmem [shape: bf16[1,12,100,256], index: 1, kind: input, shape index: {}]   ;;  %s822_s2 = inlined_call_operand.<no memory space> [shape: f32[1,1], index: 2, kind: input, shape index: {}]   ;;  %s823_s3 = inlined_call_operand.vmem [shape: f32[1,8,1,256], index: 3, kind: output, shape index: {}]  }
   0x1   :  { %v8_v0 = vstv %s822_s2  ;;  %s737_s16 = smov 0   ;;  %s739_s17 = smov 0  }
   0x2   :  { %9 = vst [vmem:[#allocation3] sm:$0x1] %v8_v0  ;;  %s741_s18 = smov 0  }
   0x3 LB: > { %s30_s2 = sadd.s32 1, %s696_s16  ;;  %s37_s19 = sadd.s32 1, %s700_s17  ;;  %s704_s18 = sphi %s741_s18, %s15_s18   ;;  %s700_s17 = sphi %s739_s17, %s827_s17   ;;  %s696_s16 = sphi %s737_s16, %s826_s16   ;;  %s692_s15 = sphi %s735_s15, %s825_s15   ;;  %s688_s14 = sphi %s733_s14, %s824_s14  }
   0x4   : > { %p31_p0 = scmp.ge.s32.totalorder %s30_s2, 5  ;;  %p577_p1 = scmp.ge.s32.totalorder %s704_s18, 1 }
   0x5   : > { %p194_p2 = scmp.lt.s32.totalorder %s704_s18, 41 }
   0x6   : > { %s829_s2 = smov (%p31_p0, %s30_s2), 0  ;;  %s831_s19 = smov (!%p31_p0, %s37_s19), %s700_s17 }
   0x7   : > { %p195_p3 = pnand %p577_p1, %p194_p2  ;;  %p39_p4 = scmp.ge.s32.totalorder %s831_s19, 8 }
   0x8   : > { %p237_p5 = scmp.lt.s32.totalorder (!%p195_p3), %s688_s14, 4  ;;  %s240_s20 = sadd.s32 (!%p195_p3), %s688_s14, %s692_s15 }
   0x9   : > { %s833_s19 = smov (%p39_p4, %s831_s19), 0  ;;  %198 = sbr.rel (%p195_p3) target bundleno = 392 (0x188), region = 32 }
   0xa   : > { %p244_p6 = scmp.lt.s32.totalorder (!%p195_p3), %s240_s20, 11  ;;  %p259_p7 = scmp.lt.s32.totalorder (!%p195_p3), %s692_s15, 7 }
   0xb   : > { %p580_p8 = scmp.ne.s32.totalorder (!%p195_p3), %s688_s14, 0 }
   0xe   : > { %s768_s21 = scalar_select %p237_p5, %s688_s14, 4 }
   0xf   : > { %s835_s20 = smov (!%p244_p6, %s240_s20), 11  ;;  %s837_s15 = smov (!%p259_p7, %s692_s15), 7 }
  0x10   : > { %s239_s24 = scalar_lea.vmem %s820_s0, %s768_s21  ;;  %s600_s25 = smul.u32 104, %s835_s20 }
  0x11   : > { %s579_s29 = sshll.u32 %s837_s15, 1  ;;  %273 = sbr.rel (%p580_p8) target bundleno = 26 (0x1a), region = 36 }
  0x12   : > { %s777_s28 = scalar_lea.vmem %s821_s1, %s600_s25  ;;  %s782_s5 = scalar_lea.vmem %s823_s3, %s579_s29 }
  0x16   : > { %v274_v1 = vlaneseq  ;;  %v706_v2 = vmov 0.0  }
  0x18   : > { %vm276_vm0 = vcmp.lt.s32.totalorder %v274_v1, 256 }
  0x19   : > { %278 = vst.msk [vmem:[#allocation2] sm:$0x3] %vm276_vm0, %v706_v2 }
  0x1a PF: > { %v293_v3 = vld [vmem:[%s777_s28 + $0x60] sm:$0x33]  ;;  %vm363_vm1 = vcmask 1041408   ;;  %v647_v6 = vld [vmem:[%s777_s28 + $0x54] ss:$8 sps:$4 sm:$0xff]   ;;  %v707_v7 = vmov 0   ;;  %v417_v23 = vlaneseq }
  0x1b   : > { %v594_v4 = vcombine.high %v293_v3, %v293_v3  ;;  %v593_v5 = vcombine.low %v293_v3, %v293_v3  ;;  %402 = vmatprep.mubr.bf16.mxu0 %v707_v7  ;;  %v649_v9 = vld [vmem:[%s777_s28 + $0x50] ss:$8 sps:$4 sm:$0xff]   ;;  %v650_v10 = vld [vmem:[%s777_s28 + $0x44] ss:$8 sps:$4 sm:$0xff]   ;;  %v652_v11 = vld [vmem:[%s777_s28 + $0x40] ss:$8 sps:$4 sm:$0xff]  }
  0x1c   : > { %v653_v12 = vld [vmem:[%s777_s28 + $0x34] ss:$8 sps:$4 sm:$0xff]   ;;  %v655_v13 = vld [vmem:[%s777_s28 + $0x30] ss:$8 sps:$4 sm:$0xff]   ;;  %v656_v14 = vld [vmem:[%s777_s28 + $0x24] ss:$8 sps:$4 sm:$0xff]  }
  0x1d   : > { %595 = vmatprep.subr.msk.bf16.mxu0 %vm363_vm1, %v594_v4  ;;  %v365_v8 = vsel %vm363_vm1, %v593_v5, 0  ;;  %v658_v15 = vld [vmem:[%s777_s28 + $0x20] ss:$8 sps:$4 sm:$0xff]   ;;  %v659_v16 = vld [vmem:[%s777_s28 + $0x14] ss:$8 sps:$4 sm:$0xff]   ;;  %vm359_vm2 = vcmask 818176  }
  0x1e   : > { %373 = vmatpush1.bf16.msra.mxu0 %v365_v8  ;;  %v661_v17 = vld [vmem:[%s777_s28 + $0x10] ss:$8 sps:$4 sm:$0xff]   ;;  %v662_v18 = vld [vmem:[%s777_s28 + $0x4] ss:$8 sps:$4 sm:$0xff]   ;;  %v664_v19 = vld [vmem:[%s777_s28] ss:$8 sps:$4 sm:$0xff]  }
  0x1f   : > { %374 = vmatprep.subr.bf16.mxu0 %v647_v6  ;;  %v280_v20 = vld [vmem:[%s239_s24] sm:$0x1]  ;;  %v708_v21 = vmov 1966171168   ;;  %v418_v25 = vshrl.u32 %v417_v23, 7  ;;  %vm432_vm3 = vcmp.lt.s32.totalorder %v417_v23, 256 }
  0x20   : > { %v415_v22 = vunpack.c.l.s4 %v708_v21  ;;  %v279_v32 = vld [vmem:[#allocation2] sm:$0x3]  ;;  %p597_p9 = scmp.ne.s32.totalorder %s688_s14, 4 }
  0x22   : > { %375 = vmatpush1.bf16.msra.mxu0 %v649_v9  ;;  %v416_v24 = vunpack.c.0.s8 %v415_v22 }
  0x23   : > { %376 = vmatprep.subr.bf16.mxu0 %v650_v10 }
  0x24   : > { %v419_v27 = vsub.s32 %v416_v24, %v418_v25 }
  0x26   : > { %377 = vmatpush1.bf16.msra.mxu0 %v652_v11 }
  0x27   : > { %378 = vmatprep.subr.bf16.mxu0 %v653_v12 }
  0x2a   : > { %379 = vmatpush1.bf16.msra.mxu0 %v655_v13 }
  0x2b   : > { %380 = vmatprep.subr.bf16.mxu0 %v656_v14 }
  0x2e   : > { %381 = vmatpush1.bf16.msra.mxu0 %v658_v15 }
  0x2f   : > { %382 = vmatprep.subr.bf16.mxu0 %v659_v16 }
  0x32   : > { %383 = vmatpush1.bf16.msra.mxu0 %v661_v17 }
  0x33   : > { %384 = vmatprep.subr.bf16.mxu0 %v662_v18 }
  0x36   : > { %385 = vmatpush1.bf16.msra.mxu0 %v664_v19 }
  0x39   : > { %596 = vmatmul.mubr.msk.bf16.vlgmr.msra.gmra.mxu0 %vm359_vm2, %v280_v20 }
  0xf9   : > { %v404_v26 = vpop.f32.mrf.mxu0 }
  0xfb   : > { %v406_v28 = vpop.f32.mrf.mxu0 }
  0xfc   : > { %v413_v29 = vcombine.low %v404_v26, %v406_v28 }
  0xfd   : > { %v408_v30 = vpop.f32.mrf.mxu0 }
  0xfe   : > { %v420_v31 = vrot.slane %v413_v29, %v419_v27 }
  0xff   : > { %v409_v33 = vpop.f32.mrf.mxu0 }
 0x100   : > { %v427_v34 = vrot.slane %v420_v31, %v419_v27  ;;  %438 = sbr.rel (%p597_p9) target bundleno = 392 (0x188), region = 40 }
 0x102   : > { %v429_v35 = vadd.f32 %v427_v34, %v279_v32 }
 0x104   : > { %434 = vst.msk [vmem:[#allocation2] sm:$0x3] %vm432_vm3, %v429_v35 }
 0x105   : > { %v440_v36 = vld [vmem:[#allocation3] sm:$0x1]  ;;  %v709_v37 = vmov 0   ;;  %v448_v38 = vsub.s32 0, %v418_v25 }
 0x106   : > { %665 = vset.pattern.permute.xlu0 %v709_v37 }
 0x107   : > { %443 = vperm.xlu0 %665, %v440_v36  }
 0x10b   : > { %v439_v40 = vld [vmem:[#allocation2] sm:$0x3] }
 0x182   : > { %v444_v39 = vpop.permute.xlu0 %443 }
 0x183   : > { %v449_v41 = vrot.slane %v444_v39, %v448_v38 }
 0x185   : > { %v450_v42 = vadd.f32 %v449_v41, %v439_v40 }
 0x187   : > { %451 = vst.msk [vmem:[%s782_s5] sm:$0x3] %vm432_vm3, %v450_v42 }
 0x188 PF: > { %s15_s18 = sadd.s32 1, %s704_s18   ;;  %s824_s14 = smov %s696_s16 }
 0x189   : > { %p12_p10 = scmp.ge.s32.totalorder %s15_s18, 42   ;;  %s825_s15 = smov %s700_s17 }
 0x18a   : > { %s826_s16 = smov %s829_s2  ;;  %s827_s17 = smov %s833_s19 }
 0x18b   :  { %14 = sbr.rel (!%p12_p10) target bundleno = 3 (0x3), region = 73 }

</bundles_post_ra>
